<compile_context>
chip_gen: v5e
topology: v5e:2x2
jax: 0.10.0
libtpu: 0.0.40
codegen_flags: <defaults>
</compile_context>

<pallas_src>
import jax
import jax.numpy as jnp
from jax import lax
from jax.experimental import pallas as pl
from jax.experimental.pallas import tpu as pltpu


def bottleneck_kernel(x_ref, halo_ref, w1_ref, b1_ref, w2_ref, b2_ref,
                      w3_ref, b3_ref, out_ref, h1pad_ref):
    TH, W, Cin = x_ref.shape
    Cmid = w1_ref.shape[1]
    Cout = w3_ref.shape[1]
    cdt = x_ref.dtype                      # matmul / activation compute dtype

    i = pl.program_id(1)                   # H-tile index
    nt = pl.num_programs(1)

    # ---- conv1 (1x1) + bn1 (scale folded into w1) + relu on the TH tile rows.
    xc = x_ref[...].reshape(TH * W, Cin)
    h1 = jnp.dot(xc, w1_ref[...], preferred_element_type=jnp.float32)
    h1 = jnp.maximum(h1 + b1_ref[...], 0.0)
    h1pad_ref[1:TH + 1, :, :] = h1.reshape(TH, W, Cmid).astype(cdt)

    # ---- conv1 on the two halo rows (row above / below this tile). Rows that fall
    # outside the image must be *zero* in h1-space (conv2 uses zero padding on h1).
    xh = halo_ref[...].reshape(2 * W, Cin)
    hh = jnp.dot(xh, w1_ref[...], preferred_element_type=jnp.float32)
    hh = jnp.maximum(hh + b1_ref[...], 0.0).reshape(2, W, Cmid).astype(cdt)

    @pl.when(i > 0)
    def _():
        h1pad_ref[0:1, :, :] = hh[0:1, :, :]

    @pl.when(i == 0)
    def _():
        h1pad_ref[0:1, :, :] = jnp.zeros((1, W, Cmid), dtype=cdt)

    @pl.when(i < nt - 1)
    def _():
        h1pad_ref[TH + 1:TH + 2, :, :] = hh[1:2, :, :]

    @pl.when(i == nt - 1)
    def _():
        h1pad_ref[TH + 1:TH + 2, :, :] = jnp.zeros((1, W, Cmid), dtype=cdt)

    # ---- conv2 (3x3, stride=1, pad=1) + bn2 + relu.
    # Stack the 3 dy taps along channels (K = 3*Cmid), then one matmul per dx tap.
    # dy shifts are plain H-axis slices of the scratch (H is outside the last two
    # dims -> no retiling); dx shifts touch only the stacked tensor, once each.
    cat = jnp.concatenate(
        [h1pad_ref[0:TH, :, :],          # dy = 0  (row h-1)
         h1pad_ref[1:TH + 1, :, :],      # dy = 1  (row h)
         h1pad_ref[2:TH + 2, :, :]],     # dy = 2  (row h+1)
        axis=-1)                         # (TH, W, 3*Cmid)

    zcol = jnp.zeros((TH, 1, 3 * Cmid), dtype=cdt)
    left = jnp.concatenate([zcol, cat[:, :W - 1, :]], axis=1)   # column w-1 (dx tap 0)
    right = jnp.concatenate([cat[:, 1:, :], zcol], axis=1)      # column w+1 (dx tap 2)

    acc = jnp.dot(left.reshape(TH * W, 3 * Cmid), w2_ref[0],
                  preferred_element_type=jnp.float32)
    acc = acc + jnp.dot(cat.reshape(TH * W, 3 * Cmid), w2_ref[1],
                        preferred_element_type=jnp.float32)
    acc = acc + jnp.dot(right.reshape(TH * W, 3 * Cmid), w2_ref[2],
                        preferred_element_type=jnp.float32)
    h2 = jnp.maximum(acc + b2_ref[...], 0.0).astype(cdt)

    # ---- conv3 (1x1) + bn3 + residual add + relu (downsample=None, stride=1).
    h3 = jnp.dot(h2, w3_ref[...], preferred_element_type=jnp.float32)
    h3 = h3 + b3_ref[...] + xc.astype(jnp.float32)
    h3 = jnp.maximum(h3, 0.0)
    out_ref[...] = h3.reshape(TH, W, Cout).astype(out_ref.dtype)


def _fold_bn(gamma, beta, mean, var, eps=1e-5):
    scale = gamma / jnp.sqrt(var + eps)
    shift = beta - mean * scale
    return scale.astype(jnp.float32), shift.astype(jnp.float32)


def _pick_tile_rows(H, W, cin, cmid, cout, itemsize, budget=6 * 1024 * 1024):
    """Largest divisor of H whose per-tile VMEM footprint fits a conservative budget."""
    per_row = W * ((cin + cout) * itemsize * 2          # x / out tiles (double-buffered)
                   + cmid * itemsize                    # h1 scratch row
                   + 3 * cmid * (2 * itemsize + 8))     # tap-concat temporaries + f32 acc
    th = max(1, min(H, budget // max(per_row, 1)))
    while H % th:
        th -= 1
    return th


def bottleneck_forward(x_nchw, params, eps=1e-5, compute_dtype=jnp.float32,
                       tile_rows=None):
    """Eval-mode Bottleneck forward. params use PyTorch layouts (conv OIHW, BN per-ch)."""
    N, Cin, H, W = x_nchw.shape
    Cmid = params["w1"].shape[0]
    Cout = params["w3"].shape[0]
    assert Cin == Cout, "stride=1 & downsample=None requires inplanes == planes*4"

    itemsize = jnp.dtype(compute_dtype).itemsize
    if tile_rows is None:
        tile_rows = _pick_tile_rows(H, W, Cin, Cmid, Cout, itemsize)
    TH = min(int(tile_rows), H)
    assert H % TH == 0, "tile_rows must divide H"
    nt = H // TH

    # NCHW -> NHWC, cast to the matmul dtype.
    x = jnp.transpose(x_nchw, (0, 2, 3, 1)).astype(compute_dtype)        # (N,H,W,Cin)

    # Per-tile 1-row halos (row above and below each TH-row band), gathered with
    # cheap XLA ops so every grid step uses simple disjoint BlockSpecs.
    xp = jnp.pad(x, ((0, 0), (1, 1), (0, 0), (0, 0)))
    top_idx = jnp.arange(nt) * TH            # padded coord of original row i*TH - 1
    bot_idx = jnp.arange(nt) * TH + TH + 1   # padded coord of original row i*TH + TH
    halo = jnp.stack([xp[:, top_idx], xp[:, bot_idx]], axis=2)           # (N,nt,2,W,Cin)

    # Fold BN scales into the conv weights; keep only the additive shifts.
    s1, sh1 = _fold_bn(params["g1"], params["be1"], params["m1"], params["v1"], eps)
    s2, sh2 = _fold_bn(params["g2"], params["be2"], params["m2"], params["v2"], eps)
    s3, sh3 = _fold_bn(params["g3"], params["be3"], params["m3"], params["v3"], eps)

    w1m = (params["w1"][:, :, 0, 0].T.astype(jnp.float32) * s1[None, :]).astype(compute_dtype)
    w3m = (params["w3"][:, :, 0, 0].T.astype(jnp.float32) * s3[None, :]).astype(compute_dtype)
    # conv2 weight: (O,I,kh,kw) -> (kw, kh*I, O): per-dx weight with dy-major rows,
    # matching the in-kernel channel stacking [dy=0 ; dy=1 ; dy=2].
    w2t = jnp.transpose(params["w2"], (3, 2, 1, 0)).astype(jnp.float32)   # (kw,kh,I,O)
    w2cat = (w2t.reshape(3, 3 * Cmid, Cmid) * s2[None, None, :]).astype(compute_dtype)

    b1 = sh1.reshape(1, Cmid)
    b2 = sh2.reshape(1, Cmid)
    b3 = sh3.reshape(1, Cout)

    grid = (N, nt)
    in_specs = [
        pl.BlockSpec((None, TH, W, Cin), lambda n, i: (n, i, 0, 0)),          # x tile
        pl.BlockSpec((None, None, 2, W, Cin), lambda n, i: (n, i, 0, 0, 0)),  # halo rows
        pl.BlockSpec((Cin, Cmid), lambda n, i: (0, 0)),                       # w1
        pl.BlockSpec((1, Cmid), lambda n, i: (0, 0)),                         # b1
        pl.BlockSpec((3, 3 * Cmid, Cmid), lambda n, i: (0, 0, 0)),            # w2
        pl.BlockSpec((1, Cmid), lambda n, i: (0, 0)),                         # b2
        pl.BlockSpec((Cmid, Cout), lambda n, i: (0, 0)),                      # w3
        pl.BlockSpec((1, Cout), lambda n, i: (0, 0)),                         # b3
    ]
    out_spec = pl.BlockSpec((None, TH, W, Cout), lambda n, i: (n, i, 0, 0))

    flops = 2 * N * H * W * (Cin * Cmid + 9 * Cmid * Cmid + Cmid * Cout)
    bytes_accessed = ((x.size + halo.size) * itemsize
                      + N * H * W * Cout * 4
                      + (w1m.size + w2cat.size + w3m.size) * itemsize
                      + (b1.size + b2.size + b3.size) * 4)

    out_nhwc = pl.pallas_call(
        bottleneck_kernel,
        out_shape=jax.ShapeDtypeStruct((N, H, W, Cout), jnp.float32),
        grid_spec=pltpu.PrefetchScalarGridSpec(
            num_scalar_prefetch=0,
            grid=grid,
            in_specs=in_specs,
            out_specs=out_spec,
            scratch_shapes=[pltpu.VMEM((TH + 2, W, Cmid), compute_dtype)],
        ),
        compiler_params=pltpu.CompilerParams(
            dimension_semantics=("parallel", "parallel"),
            vmem_limit_bytes=40 * 1024 * 1024,
        ),
        cost_estimate=pl.CostEstimate(flops=flops, transcendentals=0,
                                      bytes_accessed=bytes_accessed),
    )(x, halo, w1m, b1, w2cat, b2, w3m, b3)

    return jnp.transpose(out_nhwc, (0, 3, 1, 2))                          # NHWC -> NCHW


def bottleneck_reference(x_nchw, params, eps=1e-5):
    """Pure-JAX reference mirroring the PyTorch forward (eval-mode BN)."""
    def conv(x, w, stride=1, pad=0):
        return lax.conv_general_dilated(
            x, w, (stride, stride), [(pad, pad), (pad, pad)],
            dimension_numbers=("NCHW", "OIHW", "NCHW"))

    def bn(x, g, b, m, v):
        sc = (g / jnp.sqrt(v + eps)).reshape(1, -1, 1, 1)
        sh = (b - m * g / jnp.sqrt(v + eps)).reshape(1, -1, 1, 1)
        return x * sc + sh

    residual = x_nchw
    out = jax.nn.relu(bn(conv(x_nchw, params["w1"]),
                         params["g1"], params["be1"], params["m1"], params["v1"]))
    out = jax.nn.relu(bn(conv(out, params["w2"], stride=1, pad=1),
                         params["g2"], params["be2"], params["m2"], params["v2"]))
    out = bn(conv(out, params["w3"]),
             params["g3"], params["be3"], params["m3"], params["v3"])
    return jax.nn.relu(out + residual)


def make_params(key, inplanes, planes):
    expansion = 4
    cout = planes * expansion
    ks = jax.random.split(key, 16)
    f = jnp.float32

    def n(k, shape, s=0.1):
        return (s * jax.random.normal(k, shape)).astype(f)

    return dict(
        w1=n(ks[0], (planes, inplanes, 1, 1)),
        g1=1.0 + n(ks[1], (planes,)), be1=n(ks[2], (planes,)),
        m1=n(ks[3], (planes,)), v1=0.5 + jnp.abs(n(ks[4], (planes,))),

        w2=n(ks[5], (planes, planes, 3, 3)),
        g2=1.0 + n(ks[6], (planes,)), be2=n(ks[7], (planes,)),
        m2=n(ks[8], (planes,)), v2=0.5 + jnp.abs(n(ks[9], (planes,))),

        w3=n(ks[10], (cout, planes, 1, 1)),
        g3=1.0 + n(ks[11], (cout,)), be3=n(ks[12], (cout,)),
        m3=n(ks[13], (cout,)), v3=0.5 + jnp.abs(n(ks[14], (cout,))),
    )


if __name__ == "__main__":
    key = jax.random.PRNGKey(0)
    kx, kp = jax.random.split(key)

    # Small shapes consistent with the module: inplanes = planes * expansion.
    N, planes, H, W = 2, 16, 16, 16
    inplanes = planes * 4                      # 64 channels in == channels out

    x = jax.random.normal(kx, (N, inplanes, H, W), dtype=jnp.float32)
    params = make_params(kp, inplanes, planes)

    ref = bottleneck_reference(x, params)

    # f32 matmul path, multi-tile grid (exercises the H-halo logic), tight tolerance.
    out_f32 = jax.block_until_ready(
        bottleneck_forward(x, params, compute_dtype=jnp.float32, tile_rows=8))
    assert out_f32.shape == ref.shape == (N, inplanes, H, W)
    assert jnp.allclose(out_f32, ref, atol=1e-4, rtol=1e-4), \
        f"f32 max abs err {jnp.max(jnp.abs(out_f32 - ref))}"

    # bf16 matmul path (v6e/v7x MXU fast path; f32 accumulation), loose tolerance.
    out_bf16 = jax.block_until_ready(
        bottleneck_forward(x, params, compute_dtype=jnp.bfloat16))
    assert jnp.allclose(out_bf16, ref, atol=1e-1, rtol=1e-1), \
        f"bf16 max abs err {jnp.max(jnp.abs(out_bf16 - ref))}"

    print("KERNEL_OK")
</pallas_src>

<mosaic_0001>
module attributes {stable_mosaic.version = 11 : i64} {
  func.func @bottleneck_kernel(%arg0: i32, %arg1: i32, %arg2: memref<1x8x16x64xf32, #tpu.memory_space<vmem>>, %arg3: memref<1x1x2x16x64xf32, #tpu.memory_space<vmem>>, %arg4: memref<64x16xf32, #tpu.memory_space<vmem>>, %arg5: memref<1x16xf32, #tpu.memory_space<vmem>>, %arg6: memref<3x48x16xf32, #tpu.memory_space<vmem>>, %arg7: memref<1x16xf32, #tpu.memory_space<vmem>>, %arg8: memref<16x64xf32, #tpu.memory_space<vmem>>, %arg9: memref<1x64xf32, #tpu.memory_space<vmem>>, %arg10: memref<1x8x16x64xf32, #tpu.memory_space<vmem>>, %arg11: memref<10x16x16xf32, #tpu.memory_space<vmem>>) attributes {dimension_semantics = [#tpu.dimension_semantics<parallel>, #tpu.dimension_semantics<parallel>], iteration_bounds = array<i64: 2, 2>, scalar_prefetch = 0 : i64, scratch_operands = 1 : i64, tpu.core_type = #tpu.core_type<tc>, window_params = [{transform_indices = @transform_0, window_bounds = array<i64: 1, 8, 16, 64>}, {transform_indices = @transform_1, window_bounds = array<i64: 1, 1, 2, 16, 64>}, {pipeline_mode = #tpu.pipeline_mode<synchronous>, transform_indices = @transform_2, window_bounds = array<i64: 64, 16>}, {pipeline_mode = #tpu.pipeline_mode<synchronous>, transform_indices = @transform_3, window_bounds = array<i64: 1, 16>}, {pipeline_mode = #tpu.pipeline_mode<synchronous>, transform_indices = @transform_4, window_bounds = array<i64: 3, 48, 16>}, {pipeline_mode = #tpu.pipeline_mode<synchronous>, transform_indices = @transform_5, window_bounds = array<i64: 1, 16>}, {pipeline_mode = #tpu.pipeline_mode<synchronous>, transform_indices = @transform_6, window_bounds = array<i64: 16, 64>}, {pipeline_mode = #tpu.pipeline_mode<synchronous>, transform_indices = @transform_7, window_bounds = array<i64: 1, 64>}, {transform_indices = @transform_8, window_bounds = array<i64: 1, 8, 16, 64>}]} {
    %c0 = arith.constant 0 : index
    %c0_0 = arith.constant 0 : index
    %c0_1 = arith.constant 0 : index
    %c0_2 = arith.constant 0 : index
    %0 = vector.load %arg2[%c0, %c0_0, %c0_1, %c0_2] : memref<1x8x16x64xf32, #tpu.memory_space<vmem>>, vector<1x8x16x64xf32>
    %1 = vector.shape_cast %0 : vector<1x8x16x64xf32> to vector<8x16x64xf32>
    %2 = vector.shape_cast %1 : vector<8x16x64xf32> to vector<128x64xf32>
    %c0_3 = arith.constant 0 : index
    %c0_4 = arith.constant 0 : index
    %3 = vector.load %arg4[%c0_3, %c0_4] : memref<64x16xf32, #tpu.memory_space<vmem>>, vector<64x16xf32>
    %cst = arith.constant dense<0.000000e+00> : vector<128x16xf32>
    %4 = tpu.matmul %2, %3, %cst {dimension_numbers = #tpu.dot_dimension_numbers<[1], [0], [0], [1], [0, 0, 1, 1], [], []>} : vector<128x64xf32>, vector<64x16xf32>, vector<128x16xf32> -> vector<128x16xf32>
    %c0_5 = arith.constant 0 : index
    %c0_6 = arith.constant 0 : index
    %5 = vector.load %arg5[%c0_5, %c0_6] : memref<1x16xf32, #tpu.memory_space<vmem>>, vector<1x16xf32>
    %6 = vector.broadcast %5 : vector<1x16xf32> to vector<128x16xf32>
    %7 = arith.addf %4, %6 : vector<128x16xf32>
    %cst_7 = arith.constant 0.000000e+00 : f32
    %8 = vector.broadcast %cst_7 : f32 to vector<128x16xf32>
    %9 = arith.maximumf %7, %8 : vector<128x16xf32>
    %10 = vector.shape_cast %9 : vector<128x16xf32> to vector<8x16x16xf32>
    %c1 = arith.constant 1 : index
    %c0_8 = arith.constant 0 : index
    %c0_9 = arith.constant 0 : index
    %11 = vector.load %arg11[%c1, %c0_8, %c0_9] : memref<10x16x16xf32, #tpu.memory_space<vmem>>, vector<8x16x16xf32>
    tpu.vector_store %arg11[%c1, %c0_8, %c0_9], %10 {strides = array<i32>} : memref<10x16x16xf32, #tpu.memory_space<vmem>>, vector<8x16x16xf32>,
    %c0_10 = arith.constant 0 : index
    %c0_11 = arith.constant 0 : index
    %c0_12 = arith.constant 0 : index
    %c0_13 = arith.constant 0 : index
    %c0_14 = arith.constant 0 : index
    %12 = vector.load %arg3[%c0_10, %c0_11, %c0_12, %c0_13, %c0_14] : memref<1x1x2x16x64xf32, #tpu.memory_space<vmem>>, vector<1x1x2x16x64xf32>
    %13 = vector.shape_cast %12 : vector<1x1x2x16x64xf32> to vector<2x16x64xf32>
    %14 = vector.shape_cast %13 : vector<2x16x64xf32> to vector<32x64xf32>
    %c0_15 = arith.constant 0 : index
    %c0_16 = arith.constant 0 : index
    %15 = vector.load %arg4[%c0_15, %c0_16] : memref<64x16xf32, #tpu.memory_space<vmem>>, vector<64x16xf32>
    %cst_17 = arith.constant dense<0.000000e+00> : vector<32x16xf32>
    %16 = tpu.matmul %14, %15, %cst_17 {dimension_numbers = #tpu.dot_dimension_numbers<[1], [0], [0], [1], [0, 0, 1, 1], [], []>} : vector<32x64xf32>, vector<64x16xf32>, vector<32x16xf32> -> vector<32x16xf32>
    %c0_18 = arith.constant 0 : index
    %c0_19 = arith.constant 0 : index
    %17 = vector.load %arg5[%c0_18, %c0_19] : memref<1x16xf32, #tpu.memory_space<vmem>>, vector<1x16xf32>
    %18 = vector.broadcast %17 : vector<1x16xf32> to vector<32x16xf32>
    %19 = arith.addf %16, %18 : vector<32x16xf32>
    %cst_20 = arith.constant 0.000000e+00 : f32
    %20 = vector.broadcast %cst_20 : f32 to vector<32x16xf32>
    %21 = arith.maximumf %19, %20 : vector<32x16xf32>
    %22 = vector.shape_cast %21 : vector<32x16xf32> to vector<2x16x16xf32>
    %c0_i32 = arith.constant 0 : i32
    %23 = arith.cmpi sgt, %arg1, %c0_i32 : i32
    %24 = arith.extui %23 : i1 to i32
    %c0_i32_21 = arith.constant 0 : i32
    %25 = arith.cmpi ne, %24, %c0_i32_21 : i32
    scf.if %25 {
      %75 = vector.extract_strided_slice %22 {offsets = [0, 0, 0], sizes = [1, 16, 16], strides = [1, 1, 1]} : vector<2x16x16xf32> to vector<1x16x16xf32>
      %c0_61 = arith.constant 0 : index
      %c0_62 = arith.constant 0 : index
      %c0_63 = arith.constant 0 : index
      %76 = vector.load %arg11[%c0_61, %c0_62, %c0_63] : memref<10x16x16xf32, #tpu.memory_space<vmem>>, vector<1x16x16xf32>
      tpu.vector_store %arg11[%c0_61, %c0_62, %c0_63], %75 {strides = array<i32>} : memref<10x16x16xf32, #tpu.memory_space<vmem>>, vector<1x16x16xf32>,
    } else {
    }
    %c0_i32_22 = arith.constant 0 : i32
    %26 = arith.cmpi eq, %arg1, %c0_i32_22 : i32
    %27 = arith.extui %26 : i1 to i32
    %c0_i32_23 = arith.constant 0 : i32
    %28 = arith.cmpi ne, %27, %c0_i32_23 : i32
    scf.if %28 {
      %cst_61 = arith.constant 0.000000e+00 : f32
      %75 = vector.broadcast %cst_61 : f32 to vector<1x16x16xf32>
      %c0_62 = arith.constant 0 : index
      %c0_63 = arith.constant 0 : index
      %c0_64 = arith.constant 0 : index
      %76 = vector.load %arg11[%c0_62, %c0_63, %c0_64] : memref<10x16x16xf32, #tpu.memory_space<vmem>>, vector<1x16x16xf32>
      tpu.vector_store %arg11[%c0_62, %c0_63, %c0_64], %75 {strides = array<i32>} : memref<10x16x16xf32, #tpu.memory_space<vmem>>, vector<1x16x16xf32>,
    } else {
    }
    %c1_i32 = arith.constant 1 : i32
    %29 = arith.cmpi slt, %arg1, %c1_i32 : i32
    %30 = arith.extui %29 : i1 to i32
    %c0_i32_24 = arith.constant 0 : i32
    %31 = arith.cmpi ne, %30, %c0_i32_24 : i32
    scf.if %31 {
      %75 = vector.extract_strided_slice %22 {offsets = [1, 0, 0], sizes = [1, 16, 16], strides = [1, 1, 1]} : vector<2x16x16xf32> to vector<1x16x16xf32>
      %c9 = arith.constant 9 : index
      %c0_61 = arith.constant 0 : index
      %c0_62 = arith.constant 0 : index
      %76 = vector.load %arg11[%c9, %c0_61, %c0_62] : memref<10x16x16xf32, #tpu.memory_space<vmem>>, vector<1x16x16xf32>
      tpu.vector_store %arg11[%c9, %c0_61, %c0_62], %75 {strides = array<i32>} : memref<10x16x16xf32, #tpu.memory_space<vmem>>, vector<1x16x16xf32>,
    } else {
    }
    %c1_i32_25 = arith.constant 1 : i32
    %32 = arith.cmpi eq, %arg1, %c1_i32_25 : i32
    %33 = arith.extui %32 : i1 to i32
    %c0_i32_26 = arith.constant 0 : i32
    %34 = arith.cmpi ne, %33, %c0_i32_26 : i32
    scf.if %34 {
      %cst_61 = arith.constant 0.000000e+00 : f32
      %75 = vector.broadcast %cst_61 : f32 to vector<1x16x16xf32>
      %c9 = arith.constant 9 : index
      %c0_62 = arith.constant 0 : index
      %c0_63 = arith.constant 0 : index
      %76 = vector.load %arg11[%c9, %c0_62, %c0_63] : memref<10x16x16xf32, #tpu.memory_space<vmem>>, vector<1x16x16xf32>
      tpu.vector_store %arg11[%c9, %c0_62, %c0_63], %75 {strides = array<i32>} : memref<10x16x16xf32, #tpu.memory_space<vmem>>, vector<1x16x16xf32>,
    } else {
    }
    %c0_27 = arith.constant 0 : index
    %c0_28 = arith.constant 0 : index
    %c0_29 = arith.constant 0 : index
    %35 = vector.load %arg11[%c0_27, %c0_28, %c0_29] : memref<10x16x16xf32, #tpu.memory_space<vmem>>, vector<8x16x16xf32>
    %c1_30 = arith.constant 1 : index
    %c0_31 = arith.constant 0 : index
    %c0_32 = arith.constant 0 : index
    %36 = vector.load %arg11[%c1_30, %c0_31, %c0_32] : memref<10x16x16xf32, #tpu.memory_space<vmem>>, vector<8x16x16xf32>
    %c2 = arith.constant 2 : index
    %c0_33 = arith.constant 0 : index
    %c0_34 = arith.constant 0 : index
    %37 = vector.load %arg11[%c2, %c0_33, %c0_34] : memref<10x16x16xf32, #tpu.memory_space<vmem>>, vector<8x16x16xf32>
    %38 = tpu.concatenate %35, %36, %37 in 2 : vector<8x16x16xf32>, vector<8x16x16xf32>, vector<8x16x16xf32> -> vector<8x16x48xf32>
    %cst_35 = arith.constant 0.000000e+00 : f32
    %39 = vector.broadcast %cst_35 : f32 to vector<8x1x48xf32>
    %40 = vector.extract_strided_slice %38 {offsets = [0, 0, 0], sizes = [8, 15, 48], strides = [1, 1, 1]} : vector<8x16x48xf32> to vector<8x15x48xf32>
    %41 = tpu.concatenate %39, %40 in 1 : vector<8x1x48xf32>, vector<8x15x48xf32> -> vector<8x16x48xf32>
    %42 = vector.extract_strided_slice %38 {offsets = [0, 1, 0], sizes = [8, 15, 48], strides = [1, 1, 1]} : vector<8x16x48xf32> to vector<8x15x48xf32>
    %43 = tpu.concatenate %42, %39 in 1 : vector<8x15x48xf32>, vector<8x1x48xf32> -> vector<8x16x48xf32>
    %44 = vector.shape_cast %41 : vector<8x16x48xf32> to vector<128x48xf32>
    %c0_36 = arith.constant 0 : index
    %c0_37 = arith.constant 0 : index
    %c0_38 = arith.constant 0 : index
    %45 = vector.load %arg6[%c0_36, %c0_37, %c0_38] : memref<3x48x16xf32, #tpu.memory_space<vmem>>, vector<1x48x16xf32>
    %46 = vector.shape_cast %45 : vector<1x48x16xf32> to vector<48x16xf32>
    %cst_39 = arith.constant dense<0.000000e+00> : vector<128x16xf32>
    %47 = tpu.matmul %44, %46, %cst_39 {dimension_numbers = #tpu.dot_dimension_numbers<[1], [0], [0], [1], [0, 0, 1, 1], [], []>} : vector<128x48xf32>, vector<48x16xf32>, vector<128x16xf32> -> vector<128x16xf32>
    %48 = vector.shape_cast %38 : vector<8x16x48xf32> to vector<128x48xf32>
    %c1_40 = arith.constant 1 : index
    %c0_41 = arith.constant 0 : index
    %c0_42 = arith.constant 0 : index
    %49 = vector.load %arg6[%c1_40, %c0_41, %c0_42] : memref<3x48x16xf32, #tpu.memory_space<vmem>>, vector<1x48x16xf32>
    %50 = vector.shape_cast %49 : vector<1x48x16xf32> to vector<48x16xf32>
    %cst_43 = arith.constant dense<0.000000e+00> : vector<128x16xf32>
    %51 = tpu.matmul %48, %50, %cst_43 {dimension_numbers = #tpu.dot_dimension_numbers<[1], [0], [0], [1], [0, 0, 1, 1], [], []>} : vector<128x48xf32>, vector<48x16xf32>, vector<128x16xf32> -> vector<128x16xf32>
    %52 = arith.addf %47, %51 : vector<128x16xf32>
    %53 = vector.shape_cast %43 : vector<8x16x48xf32> to vector<128x48xf32>
    %c2_44 = arith.constant 2 : index
    %c0_45 = arith.constant 0 : index
    %c0_46 = arith.constant 0 : index
    %54 = vector.load %arg6[%c2_44, %c0_45, %c0_46] : memref<3x48x16xf32, #tpu.memory_space<vmem>>, vector<1x48x16xf32>
    %55 = vector.shape_cast %54 : vector<1x48x16xf32> to vector<48x16xf32>
    %cst_47 = arith.constant dense<0.000000e+00> : vector<128x16xf32>
    %56 = tpu.matmul %53, %55, %cst_47 {dimension_numbers = #tpu.dot_dimension_numbers<[1], [0], [0], [1], [0, 0, 1, 1], [], []>} : vector<128x48xf32>, vector<48x16xf32>, vector<128x16xf32> -> vector<128x16xf32>
    %57 = arith.addf %52, %56 : vector<128x16xf32>
    %c0_48 = arith.constant 0 : index
    %c0_49 = arith.constant 0 : index
    %58 = vector.load %arg7[%c0_48, %c0_49] : memref<1x16xf32, #tpu.memory_space<vmem>>, vector<1x16xf32>
    %59 = vector.broadcast %58 : vector<1x16xf32> to vector<128x16xf32>
    %60 = arith.addf %57, %59 : vector<128x16xf32>
    %cst_50 = arith.constant 0.000000e+00 : f32
    %61 = vector.broadcast %cst_50 : f32 to vector<128x16xf32>
    %62 = arith.maximumf %60, %61 : vector<128x16xf32>
    %c0_51 = arith.constant 0 : index
    %c0_52 = arith.constant 0 : index
    %63 = vector.load %arg8[%c0_51, %c0_52] : memref<16x64xf32, #tpu.memory_space<vmem>>, vector<16x64xf32>
    %cst_53 = arith.constant dense<0.000000e+00> : vector<128x64xf32>
    %64 = tpu.matmul %62, %63, %cst_53 {dimension_numbers = #tpu.dot_dimension_numbers<[1], [0], [0], [1], [0, 0, 1, 1], [], []>} : vector<128x16xf32>, vector<16x64xf32>, vector<128x64xf32> -> vector<128x64xf32>
    %c0_54 = arith.constant 0 : index
    %c0_55 = arith.constant 0 : index
    %65 = vector.load %arg9[%c0_54, %c0_55] : memref<1x64xf32, #tpu.memory_space<vmem>>, vector<1x64xf32>
    %66 = vector.broadcast %65 : vector<1x64xf32> to vector<128x64xf32>
    %67 = arith.addf %64, %66 : vector<128x64xf32>
    %68 = arith.addf %67, %2 : vector<128x64xf32>
    %cst_56 = arith.constant 0.000000e+00 : f32
    %69 = vector.broadcast %cst_56 : f32 to vector<128x64xf32>
    %70 = arith.maximumf %68, %69 : vector<128x64xf32>
    %71 = vector.shape_cast %70 : vector<128x64xf32> to vector<8x16x64xf32>
    %c0_57 = arith.constant 0 : index
    %c0_58 = arith.constant 0 : index
    %c0_59 = arith.constant 0 : index
    %c0_60 = arith.constant 0 : index
    %72 = vector.load %arg10[%c0_57, %c0_58, %c0_59, %c0_60] : memref<1x8x16x64xf32, #tpu.memory_space<vmem>>, vector<1x8x16x64xf32>
    %73 = vector.shape_cast %72 : vector<1x8x16x64xf32> to vector<8x16x64xf32>
    %74 = vector.shape_cast %71 : vector<8x16x64xf32> to vector<1x8x16x64xf32>
    tpu.vector_store %arg10[%c0_57, %c0_58, %c0_59, %c0_60], %74 {strides = array<i32>} : memref<1x8x16x64xf32, #tpu.memory_space<vmem>>, vector<1x8x16x64xf32>,
    return
  }
  func.func @transform_0(%arg0: i32, %arg1: i32) -> (i32, i32, i32, i32) {
    %c0_i32 = arith.constant 0 : i32
    %c0_i32_0 = arith.constant 0 : i32
    %c0_i32_1 = arith.constant 0 : i32
    return %arg0, %arg1, %c0_i32, %c0_i32_0 : i32, i32, i32, i32
  }
  func.func @transform_1(%arg0: i32, %arg1: i32) -> (i32, i32, i32, i32, i32) {
    %c0_i32 = arith.constant 0 : i32
    %c0_i32_0 = arith.constant 0 : i32
    %c0_i32_1 = arith.constant 0 : i32
    %c0_i32_2 = arith.constant 0 : i32
    return %arg0, %arg1, %c0_i32, %c0_i32_0, %c0_i32_1 : i32, i32, i32, i32, i32
  }
  func.func @transform_2(%arg0: i32, %arg1: i32) -> (i32, i32) {
    %c0_i32 = arith.constant 0 : i32
    %c0_i32_0 = arith.constant 0 : i32
    %c0_i32_1 = arith.constant 0 : i32
    return %c0_i32, %c0_i32_0 : i32, i32
  }
  func.func @transform_3(%arg0: i32, %arg1: i32) -> (i32, i32) {
    %c0_i32 = arith.constant 0 : i32
    %c0_i32_0 = arith.constant 0 : i32
    %c0_i32_1 = arith.constant 0 : i32
    return %c0_i32, %c0_i32_0 : i32, i32
  }
  func.func @transform_4(%arg0: i32, %arg1: i32) -> (i32, i32, i32) {
    %c0_i32 = arith.constant 0 : i32
    %c0_i32_0 = arith.constant 0 : i32
    %c0_i32_1 = arith.constant 0 : i32
    %c0_i32_2 = arith.constant 0 : i32
    return %c0_i32, %c0_i32_0, %c0_i32_1 : i32, i32, i32
  }
  func.func @transform_5(%arg0: i32, %arg1: i32) -> (i32, i32) {
    %c0_i32 = arith.constant 0 : i32
    %c0_i32_0 = arith.constant 0 : i32
    %c0_i32_1 = arith.constant 0 : i32
    return %c0_i32, %c0_i32_0 : i32, i32
  }
  func.func @transform_6(%arg0: i32, %arg1: i32) -> (i32, i32) {
    %c0_i32 = arith.constant 0 : i32
    %c0_i32_0 = arith.constant 0 : i32
    %c0_i32_1 = arith.constant 0 : i32
    return %c0_i32, %c0_i32_0 : i32, i32
  }
  func.func @transform_7(%arg0: i32, %arg1: i32) -> (i32, i32) {
    %c0_i32 = arith.constant 0 : i32
    %c0_i32_0 = arith.constant 0 : i32
    %c0_i32_1 = arith.constant 0 : i32
    return %c0_i32, %c0_i32_0 : i32, i32
  }
  func.func @transform_8(%arg0: i32, %arg1: i32) -> (i32, i32, i32, i32) {
    %c0_i32 = arith.constant 0 : i32
    %c0_i32_0 = arith.constant 0 : i32
    %c0_i32_1 = arith.constant 0 : i32
    return %arg0, %arg1, %c0_i32, %c0_i32_0 : i32, i32, i32, i32
  }
}

</mosaic_0001>

<bundles_post_ra>
// kernel: tpu_custom_call.1
= control target key start
LH: loop header
LB: loop body
LE: loop exit
PB: predicated region body
PF: predicated region fallthrough
CT: control target
= control target key end

     0   :  { %s2814_s0 = inlined_call_operand.hbm [shape: f32[2,16,16,64], index: 0, kind: input, shape index: {}]   ;;  %s2815_s1 = inlined_call_operand.vmem [shape: f32[2,2,2,16,64], index: 1, kind: input, shape index: {}]   ;;  %s2816_s2 = inlined_call_operand.vmem [shape: f32[64,16], index: 2, kind: input, shape index: {}]   ;;  %s2817_s3 = inlined_call_operand.vmem [shape: f32[1,16], index: 3, kind: input, shape index: {}]   ;;  %s2818_s4 = inlined_call_operand.vmem [shape: f32[3,48,16], index: 4, kind: input, shape index: {}]   ;;  %s2819_s5 = inlined_call_operand.vmem [shape: f32[1,16], index: 5, kind: input, shape index: {}]   ;;  %s2820_s6 = inlined_call_operand.vmem [shape: f32[16,64], index: 6, kind: input, shape index: {}]   ;;  %s2821_s7 = inlined_call_operand.vmem [shape: f32[1,64], index: 7, kind: input, shape index: {}]   ;;  %s2822_s8 = inlined_call_operand.hbm [shape: f32[2,16,16,64], index: 8, kind: output, shape index: {}]  }
   0x1   :  { %2831 = sst [smem:[#allocation16_spill]] %s2822_s8 }
   0x2   :  { %13 = vsyncpa [#allocation4], 0 }
   0x3   :  { %15 = vsyncpa [#allocation4 + $0x1], 0 }
   0x4   :  { %16 = vsyncpa [#allocation5], 0 }
   0x5   :  { %18 = vsyncpa [#allocation5 + $0x1], 0  ;;  %s2038_s27 = smov 0   ;;  %s2040_s28 = smov 0  }
   0x6   :  { %s2042_s29 = smov 0   ;;  %s2044_s30 = smov 0  }
   0x7   :  { %s2046_s9 = smov 0   ;;  %s2048_s10 = smov 0  }
   0x8   :  { %s2050_s11 = smov 0   ;;  %s2052_s12 = smov 0  }
   0x9 LB: > { %2832 = sst [smem:[#allocation9_spill]] %s1955_s27  ;;  %s1629_s13 = sadd.s32 4294967295, %s1983_s12   ;;  %s1983_s12 = sphi %s2052_s12, %s24_s12   ;;  %s1979_s11 = sphi %s2050_s11, %s2856_s11   ;;  %s1975_s10 = sphi %s2048_s10, %s2855_s10   ;;  %s1971_s9 = sphi %s2046_s9, %s2854_s9   ;;  %s1967_s30 = sphi %s2044_s30, %s2853_s30   ;;  %s1963_s29 = sphi %s2042_s29, %s2848_s29   ;;  %s1959_s28 = sphi %s2040_s28, %s2852_s28   ;;  %s1955_s27 = sphi %s2038_s27, %s2851_s27  }
   0xa   : > { %2833 = sst [smem:[#allocation10_spill]] %s1963_s29  ;;  %s1630_s14 = sadd.s32 4294967294, %s1983_s12  }
   0xb   : > { %s33_s15 = sadd.s32 1, %s1975_s10  ;;  %s36_s16 = sadd.s32 1, %s1979_s11 }
   0xc   : > { %p34_p0 = scmp.ge.s32.totalorder %s33_s15, 2  ;;  %s45_s17 = sadd.s32 1, %s1963_s29 }
   0xd   : > { %p52_p1 = scmp.ne.s32.totalorder %s1963_s29, %s1959_s28  ;;  %p53_p2 = scmp.eq.s32.totalorder %s1983_s12, 0 }
   0xe   : > { %s2858_s15 = smov (%p34_p0, %s33_s15), 0  ;;  %s2860_s16 = smov (!%p34_p0, %s36_s16), %s1979_s11 }
   0xf   : > { %2834 = sst [smem:[#allocation11_spill]] %s2858_s15  ;;  %s41_s18 = ssub.s32 %s1975_s10, %s2858_s15 }
  0x10   : > { %p2091_p3 = por %p53_p2, %p52_p1  ;;  %p38_p4 = scmp.ge.s32.totalorder %s2860_s16, 2 }
  0x11   : > { %p58_p5 = scmp.ne.s32.totalorder %s1959_s28, %s1955_s27  ;;  %p59_p6 = scmp.eq.s32.totalorder %s1629_s13, 0 }
  0x12   : > { %p238_p7 = scmp.eq.s32.totalorder %s1629_s13, 3  ;;  %s2862_s16 = smov (%p38_p4, %s2860_s16), 0 }
  0x13   : > { %2836 = sst [smem:[#allocation12_spill]] %s2862_s16  ;;  %p2099_p8 = por %p59_p6, %p58_p5 }
  0x14   : > { %p2103_p9 = por %p238_p7, %p52_p1  ;;  %s40_s22 = ssub.s32 %s1979_s11, %s2862_s16 }
  0x15   : > { %p244_p10 = scmp.eq.s32.totalorder %s1630_s14, 3  ;;  %s42_s23 = sor.u32 %s41_s18, %s40_s22 }
  0x16   : > { %s2838_s21 = scalar_select %p2103_p9, 1, 0 }
  0x17   : > { %p43_p11 = scmp.eq.s32.totalorder %s42_s23, 0  ;;  %p2109_p12 = por %p244_p10, %p58_p5 }
  0x18   : > { %2839 = sst [smem:[#allocation13_spill]] %s2838_s21  ;;  %p1777_p13 = scmp.lt.s32.totalorder %s1983_s12, 4 }
  0x19   : > { %s2840_s24 = scalar_select %p2109_p12, 1, 0 }
  0x1a   : > { %s282_s25 = sand.u32 1, %s1963_s29   ;;  %s1751_s15 = sshll.u32 %s1975_s10, 4 }
  0x1b   : > { %2841 = sst [smem:[#allocation14_spill]] %s2840_s24  ;;  %s1633_s13 = sshll.u32 %s282_s25, 7 }
  0x1c   : > { %s2116_s26 = scalar_select %p43_p11, %s1963_s29, %s45_s17  }
  0x1d   : > { %s1636_s27 = sshll.u32 %s1979_s11, 5  ;;  %s286_s8 = scalar_lea.vmem [#allocation3], %s1633_s13 }
  0x1e   : > { %2842 = sst [smem:[#allocation15_spill]] %s2116_s26  ;;  %s297_s21 = sshll.u32 %s286_s8, 4  ;;  %s298_s21 = int_to_ptr.vmem [resolvable:$true] %s297_s21 }
  0x1f   : > { %s292_s16 = sadd.s32 %s1751_s15, %s1636_s27  ;;  %p1770_p0 = pnand %p1777_p13, %p2091_p3 }
  0x20   : > { %s1637_s14 = sshll.u32 %s292_s16, 3  ;;  %s283_s17 = scalar_lea.sflag [#allocation4], %s282_s25 }
  0x21   : > { %s294_s23 = scalar_lea.hbm %s2814_s0, %s1637_s14  ;;  %s1985_s26 = smov 128  }
  0x22   : > { %s295_s24 = sshll.u32 %s294_s23, 4  ;;  %s1986_s29 = smov 8   ;;  %s296_s24 = int_to_ptr.hbm [resolvable:$true] %s295_s24 }
  0x23   : > { %1772 = dma.hbm_to_vmem [thread:$0]  (!%p1770_p0), %s296_s24, 2048, %s298_s21, %s283_s17, %s1985_s26, %s1985_s26, %s1986_s29  }
  0x24   : > { %p1638_p1 = scmp.ge.s32.totalorder %s1983_s12, 1  ;;  %p317_p2 = scmp.lt.s32.totalorder %s1983_s12, 5 }
  0x26   : > { %p318_p4 = pnand %p1638_p1, %p317_p2 }
  0x27   : > { %s2128_s8 = sand.u32 (!%p318_p4), 1, %s1959_s28  }
  0x28   : > { %321 = sbr.rel (%p318_p4) target bundleno = 919 (0x397), region = 52  ;;  %s1639_s27 = sshll.u32 (!%p318_p4), %s2128_s8, 7 }
  0x29   : > { %s324_s15 = scalar_lea.sflag (!%p318_p4), [#allocation4], %s2128_s8  ;;  %s2134_s16 = scalar_lea.vmem (!%p318_p4), [#allocation3], %s1639_s27 }
  0x2d   : > { %1946 = dma.done.wait (%p2099_p8), %s324_s15, 2048  }
  0x2e   : > { %1948 = vsyncadd (%p2099_p8), %s324_s15, 4294965248  ;;  %v404_v0 = vld [vmem:[%s2816_s2 + $0x38] sm:$0xff]  ;;  %v403_v1 = vld [vmem:[%s2816_s2 + $0x30] sm:$0xff]  ;;  %vm409_vm0 = vcmask 523264   ;;  %p371_p3 = scmp.lt.s32.totalorder %s1971_s9, 1  ;;  %p373_p5 = scmp.lt.s32.totalorder %s1967_s30, 1 }
  0x2f   : > { %466 = vmatpush.msra.mxu0 %v404_v0  ;;  %593 = vmatpush.msra.mxu1 %v404_v0  ;;  %v402_v2 = vld [vmem:[%s2816_s2 + $0x28] sm:$0xff]  ;;  %v401_v3 = vld [vmem:[%s2816_s2 + $0x20] sm:$0xff]  ;;  %v400_v4 = vld [vmem:[%s2816_s2 + $0x18] sm:$0xff]  ;;  %vm540_vm1 = vcmask 130048   ;;  %s2297_s29 = scalar_lea.vmem [#allocation6], %s1639_s27  ;;  %p1664_p6 = scmp.le.s32.totalorder %s1967_s30, 0 }
  0x30   : > { %v399_v5 = vld [vmem:[%s2816_s2 + $0x10] sm:$0xff]  ;;  %v398_v6 = vld [vmem:[%s2816_s2 + $0x8] sm:$0xff]  ;;  %v397_v7 = vld [vmem:[%s2816_s2] sm:$0xff]  ;;  %s372_s21 = scalar_select %p371_p3, %s1971_s9, 1 }
  0x31   : > { %467 = vmatpush.msra.mxu0 %v403_v1  ;;  %594 = vmatpush.msra.mxu1 %v403_v1  ;;  %v2165_v8 = vld [vmem:[%s2134_s16] sm:$0xff]  ;;  %v2170_v9 = vld [vmem:[%s2134_s16 + $0x8] sm:$0xff]  ;;  %v2175_v10 = vld [vmem:[%s2134_s16 + $0x10] sm:$0xff]  ;;  %s374_s24 = scalar_select %p373_p5, %s1967_s30, 1 }
  0x32   : > { %v2180_v11 = vld [vmem:[%s2134_s16 + $0x18] sm:$0xff]  ;;  %v2185_v12 = vld [vmem:[%s2134_s16 + $0x20] sm:$0xff]  ;;  %v2190_v13 = vld [vmem:[%s2134_s16 + $0x28] sm:$0xff]  ;;  %s1642_s26 = sshll.u32 %s372_s21, 3 }
  0x33   : > { %468 = vmatpush.msra.mxu0 %v402_v2  ;;  %595 = vmatpush.msra.mxu1 %v402_v2  ;;  %v2197_v14 = vld [vmem:[%s2134_s16 + $0x30] sm:$0xff]  ;;  %s1641_s25 = sshll.u32 %s374_s24, 2  ;;  %v2204_v15 = vld [vmem:[%s2134_s16 + $0x38] sm:$0xff]  ;;  %v2209_v16 = vld [vmem:[%s2134_s16 + $0x40] sm:$0xff] }
  0x34   : > { %s377_s13 = sadd.s32 %s1642_s26, %s1641_s25  ;;  %v2218_v18 = vld [vmem:[%s2134_s16 + $0x48] sm:$0xff]  ;;  %v2224_v20 = vld [vmem:[%s2134_s16 + $0x50] sm:$0xff]  ;;  %v2230_v22 = vld [vmem:[%s2134_s16 + $0x58] sm:$0xff] }
  0x35   : > { %469 = vmatpush.msra.mxu0 %v401_v3  ;;  %596 = vmatpush.msra.mxu1 %v401_v3  ;;  %s1643_s20 = sshll.u32 %s377_s13, 3  ;;  %v2236_v24 = vld [vmem:[%s2134_s16 + $0x60] sm:$0xff]  ;;  %v2241_v25 = vld [vmem:[%s2134_s16 + $0x68] sm:$0xff]  ;;  %v2246_v26 = vld [vmem:[%s2134_s16 + $0x70] sm:$0xff] }
  0x36   : > { %s379_s22 = scalar_lea.vmem %s2815_s1, %s1643_s20  ;;  %v2251_v27 = vld [vmem:[%s2134_s16 + $0x78] sm:$0xff]  ;;  %v2258_v28 = vld [vmem:[%s2817_s3] ss:$0 sm:$0xff] }
  0x37   : > { %470 = vmatpush.msra.mxu0 %v400_v4  ;;  %597 = vmatpush.msra.mxu1 %v400_v4  ;;  %v557_v17 = vld [vmem:[%s379_s22] sm:$0xff]  ;;  %v558_v19 = vld [vmem:[%s379_s22 + $0x8] sm:$0xff]  ;;  %v559_v21 = vld [vmem:[%s379_s22 + $0x10] sm:$0xff] }
  0x38   : > { %v560_v23 = vld [vmem:[%s379_s22 + $0x18] sm:$0xff]  ;;  %v1852_v55 = vld [vmem:[%s2817_s3] ss:$0 sm:$0xff] }
  0x39   : > { %471 = vmatpush.msra.mxu0 %v399_v5  ;;  %598 = vmatpush.msra.mxu1 %v399_v5 }
  0x3b   : > { %472 = vmatpush.msra.mxu0 %v398_v6  ;;  %599 = vmatpush.msra.mxu1 %v398_v6 }
  0x3d   : > { %473 = vmatpush.msra.mxu0 %v397_v7  ;;  %600 = vmatpush.msra.mxu1 %v397_v7 }
  0x3e   : > { %1644 = vmatmul.msk.f32.vlgmr.msra.gmra.mxu0 %vm409_vm0, %v2165_v8  ;;  %1660 = vmatmul.msk.f32.vlgmr.msra.gmra.mxu1 %vm409_vm0, %v557_v17 }
  0x46   : > { %1645 = vmatmul.msk.f32.gmra.mxu0 %vm409_vm0, %v2170_v9  ;;  %1661 = vmatmul.msk.f32.gmra.mxu1 %vm409_vm0, %v558_v19 }
  0x4e   : > { %1646 = vmatmul.msk.f32.gmra.mxu0 %vm409_vm0, %v2175_v10  ;;  %1662 = vmatmul.msk.f32.gmra.mxu1 %vm409_vm0, %v559_v21 }
  0x56   : > { %1647 = vmatmul.msk.f32.gmra.mxu0 %vm409_vm0, %v2180_v11  ;;  %1663 = vmatmul.msk.f32.gmra.mxu1 %vm409_vm0, %v560_v23 }
  0x5e   : > { %1648 = vmatmul.msk.f32.gmra.mxu0 %vm409_vm0, %v2185_v12 }
  0x66   : > { %1649 = vmatmul.msk.f32.gmra.mxu0 %vm409_vm0, %v2190_v13 }
  0x6e   : > { %1650 = vmatmul.msk.f32.gmra.mxu0 %vm409_vm0, %v2197_v14 }
  0x76   : > { %1651 = vmatmul.msk.f32.gmra.mxu0 %vm409_vm0, %v2204_v15 }
  0x7e   : > { %1652 = vmatmul.msk.f32.gmra.mxu0 %vm409_vm0, %v2209_v16 }
  0x86   : > { %1653 = vmatmul.msk.f32.gmra.mxu0 %vm409_vm0, %v2218_v18 }
  0x8e   : > { %1654 = vmatmul.msk.f32.gmra.mxu0 %vm409_vm0, %v2224_v20 }
  0x96   : > { %1655 = vmatmul.msk.f32.gmra.mxu0 %vm409_vm0, %v2230_v22 }
  0x9e   : > { %1656 = vmatmul.msk.f32.gmra.mxu0 %vm409_vm0, %v2236_v24 }
  0xa6   : > { %1657 = vmatmul.msk.f32.gmra.mxu0 %vm409_vm0, %v2241_v25 }
  0xae   : > { %1658 = vmatmul.msk.f32.gmra.mxu0 %vm409_vm0, %v2246_v26 }
  0xb6   : > { %1659 = vmatmul.msk.f32.gmra.mxu0 %vm409_vm0, %v2251_v27 }
  0xbb   : > { %v475_v29 = vpop.f32.mrf.mxu0  ;;  %v602_v56 = vpop.f32.mrf.mxu1 }
  0xbc   : > { %v476_v30 = vadd.f32 %v2258_v28, %v475_v29  ;;  %v603_v58 = vadd.f32 %v1852_v55, %v602_v56 }
  0xbe   : > { %v523_v31 = vmax.f32 %v476_v30, 0.0  ;;  %v614_v59 = vmax.f32 %v603_v58, 0.0 }
  0xc0   : > { %541 = vst.msk [vmem:[#allocation2 + $0x10] sm:$0xff] %vm540_vm1, %v523_v31 }
  0xc3   : > { %v478_v32 = vpop.f32.mrf.mxu0  ;;  %v605_v62 = vpop.f32.mrf.mxu1 }
  0xc4   : > { %v479_v33 = vadd.f32 %v2258_v28, %v478_v32  ;;  %v606_v0 = vadd.f32 %v1852_v55, %v605_v62 }
  0xc6   : > { %v524_v34 = vmax.f32 %v479_v33, 0.0  ;;  %v615_v1 = vmax.f32 %v606_v0, 0.0 }
  0xc8   : > { %542 = vst.msk [vmem:[#allocation2 + $0x18] sm:$0xff] %vm540_vm1, %v524_v34 }
  0xcb   : > { %v481_v35 = vpop.f32.mrf.mxu0  ;;  %v608_v4 = vpop.f32.mrf.mxu1 }
  0xcc   : > { %v482_v36 = vadd.f32 %v2258_v28, %v481_v35  ;;  %v609_v6 = vadd.f32 %v1852_v55, %v608_v4 }
  0xce   : > { %v525_v37 = vmax.f32 %v482_v36, 0.0  ;;  %v616_v7 = vmax.f32 %v609_v6, 0.0 }
  0xd0   : > { %543 = vst.msk [vmem:[#allocation2 + $0x20] sm:$0xff] %vm540_vm1, %v525_v37 }
  0xd3   : > { %v484_v38 = vpop.f32.mrf.mxu0  ;;  %v611_v21 = vpop.f32.mrf.mxu1 }
  0xd4   : > { %v485_v39 = vadd.f32 %v2258_v28, %v484_v38  ;;  %v612_v29 = vadd.f32 %v1852_v55, %v611_v21 }
  0xd6   : > { %v526_v40 = vmax.f32 %v485_v39, 0.0  ;;  %v617_v30 = vmax.f32 %v612_v29, 0.0 }
  0xd8   : > { %544 = vst.msk [vmem:[#allocation2 + $0x28] sm:$0xff] %vm540_vm1, %v526_v40 }
  0xdb   : > { %v487_v41 = vpop.f32.mrf.mxu0 }
  0xdc   : > { %v488_v42 = vadd.f32 %v2258_v28, %v487_v41 }
  0xde   : > { %v527_v43 = vmax.f32 %v488_v42, 0.0 }
  0xe0   : > { %545 = vst.msk [vmem:[#allocation2 + $0x30] sm:$0xff] %vm540_vm1, %v527_v43 }
  0xe3   : > { %v490_v44 = vpop.f32.mrf.mxu0 }
  0xe4   : > { %v491_v45 = vadd.f32 %v2258_v28, %v490_v44 }
  0xe6   : > { %v528_v46 = vmax.f32 %v491_v45, 0.0 }
  0xe8   : > { %546 = vst.msk [vmem:[#allocation2 + $0x38] sm:$0xff] %vm540_vm1, %v528_v46 }
  0xeb   : > { %v493_v47 = vpop.f32.mrf.mxu0 }
  0xec   : > { %v494_v48 = vadd.f32 %v2258_v28, %v493_v47 }
  0xee   : > { %v529_v49 = vmax.f32 %v494_v48, 0.0 }
  0xf0   : > { %547 = vst.msk [vmem:[#allocation2 + $0x40] sm:$0xff] %vm540_vm1, %v529_v49 }
  0xf3   : > { %v496_v50 = vpop.f32.mrf.mxu0 }
  0xf4   : > { %v497_v51 = vadd.f32 %v2258_v28, %v496_v50 }
  0xf6   : > { %v530_v52 = vmax.f32 %v497_v51, 0.0 }
  0xf8   : > { %548 = vst.msk [vmem:[#allocation2 + $0x48] sm:$0xff] %vm540_vm1, %v530_v52 }
  0xfb   : > { %v499_v53 = vpop.f32.mrf.mxu0 }
  0xfc   : > { %v500_v54 = vadd.f32 %v2258_v28, %v499_v53 }
  0xfe   : > { %v531_v57 = vmax.f32 %v500_v54, 0.0 }
 0x100   : > { %549 = vst.msk [vmem:[#allocation2 + $0x50] sm:$0xff] %vm540_vm1, %v531_v57 }
 0x103   : > { %v502_v60 = vpop.f32.mrf.mxu0 }
 0x104   : > { %v503_v61 = vadd.f32 %v2258_v28, %v502_v60 }
 0x106   : > { %v532_v63 = vmax.f32 %v503_v61, 0.0 }
 0x108   : > { %550 = vst.msk [vmem:[#allocation2 + $0x58] sm:$0xff] %vm540_vm1, %v532_v63 }
 0x10b   : > { %v505_v2 = vpop.f32.mrf.mxu0 }
 0x10c   : > { %v506_v3 = vadd.f32 %v2258_v28, %v505_v2 }
 0x10e   : > { %v533_v5 = vmax.f32 %v506_v3, 0.0 }
 0x110   : > { %551 = vst.msk [vmem:[#allocation2 + $0x60] sm:$0xff] %vm540_vm1, %v533_v5 }
 0x113   : > { %v508_v17 = vpop.f32.mrf.mxu0 }
 0x114   : > { %v509_v19 = vadd.f32 %v2258_v28, %v508_v17 }
 0x116   : > { %v534_v23 = vmax.f32 %v509_v19, 0.0 }
 0x118   : > { %552 = vst.msk [vmem:[#allocation2 + $0x68] sm:$0xff] %vm540_vm1, %v534_v23 }
 0x11b   : > { %v511_v31 = vpop.f32.mrf.mxu0 }
 0x11c   : > { %v512_v32 = vadd.f32 %v2258_v28, %v511_v31 }
 0x11e   : > { %v535_v33 = vmax.f32 %v512_v32, 0.0 }
 0x120   : > { %553 = vst.msk [vmem:[#allocation2 + $0x70] sm:$0xff] %vm540_vm1, %v535_v33 }
 0x123   : > { %v514_v34 = vpop.f32.mrf.mxu0 }
 0x124   : > { %v515_v35 = vadd.f32 %v2258_v28, %v514_v34 }
 0x126   : > { %v536_v36 = vmax.f32 %v515_v35, 0.0 }
 0x128   : > { %554 = vst.msk [vmem:[#allocation2 + $0x78] sm:$0xff] %vm540_vm1, %v536_v36 }
 0x12b   : > { %v517_v37 = vpop.f32.mrf.mxu0 }
 0x12c   : > { %v518_v38 = vadd.f32 %v2258_v28, %v517_v37 }
 0x12e   : > { %v537_v39 = vmax.f32 %v518_v38, 0.0 }
 0x130   : > { %555 = vst.msk [vmem:[#allocation2 + $0x80] sm:$0xff] %vm540_vm1, %v537_v39 }
 0x133   : > { %v520_v40 = vpop.f32.mrf.mxu0 }
 0x134   : > { %v521_v41 = vadd.f32 %v2258_v28, %v520_v40  ;;  %621 = sbr.rel (%p1664_p6) target bundleno = 315 (0x13b), region = 60 }
 0x136   : > { %v538_v42 = vmax.f32 %v521_v41, 0.0 }
 0x138   : > { %556 = vst.msk [vmem:[#allocation2 + $0x88] sm:$0xff] %vm540_vm1, %v538_v42 }
 0x139   : > { %622 = vst.msk [vmem:[#allocation2] sm:$0xff] %vm540_vm1, %v614_v59 }
 0x13a   : > { %623 = vst.msk [vmem:[#allocation2 + $0x8] sm:$0xff] %vm540_vm1, %v615_v1 }
 0x13b PF: > { %p1665_p7 = scmp.ne.s32.totalorder %s1967_s30, 0 }
 0x13d   : > { %627 = sbr.rel (%p1665_p7) target bundleno = 325 (0x145), region = 64 }
 0x142   : > { %v1987_v43 = vmov 0.0  }
 0x143   : > { %628 = vst.msk [vmem:[#allocation2] sm:$0xff] %vm540_vm1, %v1987_v43 }
 0x144   : > { %629 = vst.msk [vmem:[#allocation2 + $0x8] sm:$0xff] %vm540_vm1, %v1987_v43 }
 0x145 PF: > { %p1666_p8 = scmp.ge.s32.totalorder %s1967_s30, 1 }
 0x147   : > { %633 = sbr.rel (%p1666_p8) target bundleno = 334 (0x14e), region = 68 }
 0x14c   : > { %635 = vst.msk [vmem:[#allocation2 + $0x90] sm:$0xff] %vm540_vm1, %v616_v7 }
 0x14d   : > { %636 = vst.msk [vmem:[#allocation2 + $0x98] sm:$0xff] %vm540_vm1, %v617_v30 }
 0x14e PF: > { %p1667_p10 = scmp.ne.s32.totalorder %s1967_s30, 1 }
 0x150   : > { %640 = sbr.rel (%p1667_p10) target bundleno = 344 (0x158), region = 72 }
 0x155   : > { %v1988_v28 = vmov 0.0  }
 0x156   : > { %642 = vst.msk [vmem:[#allocation2 + $0x90] sm:$0xff] %vm540_vm1, %v1988_v28 }
 0x157   : > { %643 = vst.msk [vmem:[#allocation2 + $0x98] sm:$0xff] %vm540_vm1, %v1988_v28 }
 0x158 PF: > { %v2311_v44 = vld [vmem:[#allocation2 + $0x68] sm:$0xff]  ;;  %v2313_v45 = vld [vmem:[#allocation2 + $0x60] sm:$0xff]  ;;  %s1989_s27 = smov 16   ;;  %v2319_v46 = vld [vmem:[#allocation2 + $0x70] sm:$0xff]  ;;  %s1990_s19 = smov 32   ;;  %vm837_vm2 = vcmask 261120  }
 0x159   : > { %731 = vrot.lane.b32.xlu1 %v2311_v44, %s1989_s27  ;;  %729 = vrot.lane.b32.xlu0 %v2313_v45, %s1989_s27  ;;  %v2323_v47 = vld [vmem:[#allocation2 + $0x78] sm:$0xff]  ;;  %v689_v48 = vld [vmem:[#allocation2 + $0x80] sm:$0xff]  ;;  %v690_v49 = vld [vmem:[#allocation2 + $0x88] sm:$0xff]  ;;  %vm965_vm3 = vcmask 392192   ;;  %vm911_vm4 = vcmask 1046528   ;;  %vm870_vm5 = vcmask 1040384  }
 0x15a   : > { %733 = vrot.lane.b32.xlu2 %v2319_v46, %s1989_s27  ;;  %v2337_v52 = vld [vmem:[#allocation2 + $0x10] sm:$0xff]  ;;  %v2339_v53 = vld [vmem:[#allocation2 + $0x20] sm:$0xff]  ;;  %v2341_v54 = vld [vmem:[#allocation2 + $0x18] sm:$0xff]  ;;  %s1747_s21 = sshll.u32 %s1971_s9, 5  ;;  %s2843_s20 = sld [smem:[#allocation16_spill]] }
 0x15b   : > { %v2349_v55 = vld [vmem:[#allocation2 + $0x28] sm:$0xff]  ;;  %v2351_v56 = vld [vmem:[#allocation2 + $0x30] sm:$0xff]  ;;  %v2359_v57 = vld [vmem:[#allocation2 + $0x38] sm:$0xff]  ;;  %s1500_s22 = scalar_lea.sflag [#allocation5], %s2128_s8 }
 0x15c   : > { %v1673_v58 = vld [vmem:[%s2818_s4 + $0x58] sm:$0xff]  ;;  %v2370_v59 = vld [vmem:[#allocation2 + $0x40] sm:$0xff]  ;;  %v2372_v60 = vld [vmem:[#allocation2 + $0x48] sm:$0xff] }
 0x15d   : > { %v691_v50 = vld [vmem:[#allocation2 + $0x90] sm:$0xff]  ;;  %1754 = vmatpush.msra.mxu3 %v1673_v58  ;;  %1008 = vmatpush.msrb.mxu0 %v1673_v58  ;;  %v684_v62 = vld [vmem:[#allocation2 + $0x58] sm:$0xff]  ;;  %v1671_v0 = vld [vmem:[%s2818_s4 + $0x48] sm:$0xff] }
 0x15e   : > { %v692_v51 = vld [vmem:[#allocation2 + $0x98] sm:$0xff]  ;;  %1753 = vmatpush.msra.mxu2 %v1673_v58  ;;  %v683_v61 = vld [vmem:[#allocation2 + $0x50] sm:$0xff]  ;;  %v1670_v1 = vld [vmem:[%s2818_s4 + $0x40] sm:$0xff] }
 0x15f   : > { %v1672_v63 = vld [vmem:[%s2818_s4 + $0x50] sm:$0xff]  ;;  %v1669_v2 = vld [vmem:[%s2818_s4 + $0x38] sm:$0xff]  ;;  %v957_v4 = vld [vmem:[%s2818_s4 + $0x28] sm:$0xff] }
 0x160   : > { %1756 = vmatpush.msra.mxu3 %v1672_v63  ;;  %1009 = vmatpush.msrb.mxu0 %v1672_v63  ;;  %v1668_v3 = vld [vmem:[%s2818_s4 + $0x30] sm:$0xff]  ;;  %v956_v5 = vld [vmem:[%s2818_s4 + $0x20] sm:$0xff]  ;;  %v955_v7 = vld [vmem:[%s2818_s4 + $0x18] sm:$0xff] }
 0x161   : > { %795 = vrot.lane.b32.xlu1 %v2323_v47, %s1990_s19  ;;  %793 = vrot.lane.b32.xlu0 %v2319_v46, %s1990_s19  ;;  %v1711_v21 = vld [vmem:[%s2818_s4 + $0x88] sm:$0xff]  ;;  %v954_v23 = vld [vmem:[%s2818_s4 + $0x10] sm:$0xff] }
 0x162   : > { %797 = vrot.lane.b32.xlu2 %v689_v48, %s1990_s19  ;;  %1755 = vmatpush.msra.mxu2 %v1672_v63  ;;  %v1710_v29 = vld [vmem:[%s2818_s4 + $0x80] sm:$0xff]  ;;  %v1709_v31 = vld [vmem:[%s2818_s4 + $0x78] sm:$0xff]  ;;  %v1708_v32 = vld [vmem:[%s2818_s4 + $0x70] sm:$0xff] }
 0x163   : > { %1758 = vmatpush.msra.mxu3 %v1671_v0  ;;  %1010 = vmatpush.msrb.mxu0 %v1671_v0  ;;  %v1707_v39 = vld [vmem:[%s2818_s4 + $0x68] sm:$0xff]  ;;  %v1706_v28 = vld [vmem:[%s2818_s4 + $0x60] sm:$0xff] }
 0x164   : > { %1757 = vmatpush.msra.mxu2 %v1671_v0  ;;  %1225 = vmatpush.msrb.mxu1 %v1711_v21  ;;  %v953_v43 = vld [vmem:[%s2818_s4 + $0x8] sm:$0xff] }
 0x165   : > { %1760 = vmatpush.msra.mxu3 %v1670_v1  ;;  %1011 = vmatpush.msrb.mxu0 %v1670_v1 }
 0x166   : > { %1759 = vmatpush.msra.mxu2 %v1670_v1  ;;  %1226 = vmatpush.msrb.mxu1 %v1710_v29 }
 0x167   : > { %1762 = vmatpush.msra.mxu3 %v1669_v2  ;;  %1012 = vmatpush.msrb.mxu0 %v1669_v2 }
 0x168   : > { %1761 = vmatpush.msra.mxu2 %v1669_v2  ;;  %1227 = vmatpush.msrb.mxu1 %v1709_v31 }
 0x169   : > { %735 = vrot.lane.b32.xlu0 %v2323_v47, %s1989_s27  ;;  %799 = vrot.lane.b32.xlu1 %v690_v49, %s1990_s19 }
 0x16a   : > { %737 = vrot.lane.b32.xlu2 %v689_v48, %s1989_s27  ;;  %1764 = vmatpush.msra.mxu3 %v1668_v3 }
 0x16b   : > { %1013 = vmatpush.msrb.mxu0 %v1668_v3  ;;  %1763 = vmatpush.msra.mxu2 %v1668_v3  ;;  %v952_v3 = vld [vmem:[%s2818_s4] sm:$0xff] }
 0x16c   : > { %1113 = vmatpush.msrb.mxu3 %v957_v4  ;;  %1228 = vmatpush.msrb.mxu1 %v1708_v32 }
 0x16e   : > { %1114 = vmatpush.msrb.mxu3 %v956_v5  ;;  %1229 = vmatpush.msrb.mxu1 %v1707_v39 }
 0x170   : > { %1115 = vmatpush.msrb.mxu3 %v955_v7  ;;  %1230 = vmatpush.msrb.mxu1 %v1706_v28  ;;  %v645_v28 = vld [vmem:[#allocation2 + $0x8] sm:$0xff] }
 0x171   : > { %801 = vrot.lane.b32.xlu0 %v691_v50, %s1990_s19  ;;  %739 = vrot.lane.b32.xlu1 %v690_v49, %s1989_s27 }
 0x172   : > { %803 = vrot.lane.b32.xlu2 %v692_v51, %s1990_s19  ;;  %1116 = vmatpush.msrb.mxu3 %v954_v23 }
 0x174   : > { %1117 = vmatpush.msrb.mxu3 %v953_v43 }
 0x176   : > { %1118 = vmatpush.msrb.mxu3 %v952_v3 }
 0x179   : > { %709 = vrot.lane.b32.xlu0 %v2337_v52, %s1989_s27  ;;  %773 = vrot.lane.b32.xlu1 %v2339_v53, %s1990_s19 }
 0x17a   : > { %711 = vrot.lane.b32.xlu2 %v2341_v54, %s1989_s27 }
 0x181   : > { %775 = vrot.lane.b32.xlu0 %v2349_v55, %s1990_s19  ;;  %713 = vrot.lane.b32.xlu1 %v2339_v53, %s1989_s27 }
 0x182   : > { %777 = vrot.lane.b32.xlu2 %v2351_v56, %s1990_s19 }
 0x189   : > { %715 = vrot.lane.b32.xlu0 %v2349_v55, %s1989_s27  ;;  %779 = vrot.lane.b32.xlu1 %v2359_v57, %s1990_s19 }
 0x18a   : > { %717 = vrot.lane.b32.xlu2 %v2351_v56, %s1989_s27 }
 0x191   : > { %719 = vrot.lane.b32.xlu1 %v2359_v57, %s1989_s27  ;;  %781 = vrot.lane.b32.xlu0 %v2370_v59, %s1990_s19 }
 0x192   : > { %783 = vrot.lane.b32.xlu2 %v2372_v60, %s1990_s19 }
 0x199   : > { %721 = vrot.lane.b32.xlu0 %v2370_v59, %s1989_s27  ;;  %785 = vrot.lane.b32.xlu1 %v683_v61, %s1990_s19 }
 0x19a   : > { %723 = vrot.lane.b32.xlu2 %v2372_v60, %s1989_s27 }
 0x1a1   : > { %787 = vrot.lane.b32.xlu0 %v684_v62, %s1990_s19  ;;  %725 = vrot.lane.b32.xlu1 %v683_v61, %s1989_s27 }
 0x1a2   : > { %789 = vrot.lane.b32.xlu2 %v2313_v45, %s1990_s19 }
 0x1a9   : > { %727 = vrot.lane.b32.xlu0 %v684_v62, %s1989_s27  ;;  %791 = vrot.lane.b32.xlu1 %v2311_v44, %s1990_s19  ;;  %s1752_s19 = sshll.u32 %s1967_s30, 4  ;;  %s1515_s30 = sshll.u32 %s2297_s29, 4  ;;  %s1516_s30 = int_to_ptr.vmem [resolvable:$true] %s1515_s30 }
 0x1aa   : > { %s1512_s24 = sadd.s32 %s1752_s19, %s1747_s21  ;;  %s1905_s27 = scalar_lea.hbm %s2843_s20, 512 }
 0x1ab   : > { %s1748_s25 = sshll.u32 %s1512_s24, 3 }
 0x1ac   : > { %s1514_s14 = scalar_lea.hbm %s2843_s20, %s1748_s25 }
 0x1ad   : > { %s1517_s9 = sshll.u32 %s1514_s14, 4  ;;  %s1518_s9 = int_to_ptr.hbm [resolvable:$true] %s1517_s9 }
 0x1ae   : > { %s1899_s23 = sshra.s32 %s1518_s9, 4  ;;  %s1900_s23 = int_to_ptr.hbm [resolvable:$true] %s1899_s23 }
 0x1af   : > { %s1901_s17 = scalar_lea.hbm %s1900_s23, 128  ;;  %p1906_p1 = scmp.lt.s32.totalorder %s1900_s23, %s2843_s20 }
 0x1b0   : > { %p1902_p11 = scmp.ne.s32.totalorder %s1900_s23, %s1901_s17  ;;  %p1907_p2 = scmp.lt.s32.totalorder %s1905_s27, %s1901_s17 }
 0x1b2   : > { %p1903_p13 = pnand %p1902_p11, %p2103_p9  ;;  %p1908_p4 = por %p1907_p2, %p1906_p1 }
 0x1b4   : > { %v734_v6 = vpop.permute.xlu2 %733  ;;  %p1904_p0 = pneg %p1903_p13 }
 0x1b5   : > { %v833_v48 = vsel %vm540_vm1, %v2313_v45, %v734_v6 }
 0x1b6   : > { %p1909_p3 = pnand %p1908_p4, %p1904_p0 }
 0x1bc   : > { %v798_v30 = vpop.permute.xlu2 %797 }
 0x1c4   : > { %v738_v51 = vpop.permute.xlu2 %737 }
 0x1c5   : > { %v835_v7 = vsel %vm540_vm1, %v2319_v46, %v738_v51 }
 0x1cb   : > { %v732_v17 = vpop.permute.xlu1 %731  ;;  %v730_v19 = vpop.permute.xlu0 %729 }
 0x1cc   : > { %v832_v33 = vsel %vm540_vm1, %v684_v62, %v732_v17  ;;  %v831_v34 = vsel %vm540_vm1, %v683_v61, %v730_v19  ;;  %v2467_v61 = vsel %vm837_vm2, %v833_v48, %v798_v30  ;;  %v804_v17 = vpop.permute.xlu2 %803 }
 0x1cd   : > { %v930_v0 = vrot.slane %v2467_v61, 1  ;;  %v889_v1 = vrot.slane %v2467_v61, 7 }
 0x1d3   : > { %v796_v35 = vpop.permute.xlu1 %795  ;;  %v794_v36 = vpop.permute.xlu0 %793 }
 0x1d4   : > { %v2434_v37 = vsel %vm837_vm2, %v831_v34, %v794_v36  ;;  %v2437_v38 = vsel %vm837_vm2, %v832_v33, %v796_v35  ;;  %v644_v35 = vld [vmem:[#allocation2] sm:$0xff] }
 0x1d5   : > { %v927_v40 = vrot.slane %v2434_v37, 1  ;;  %1684 = vmatmul.msk.f32.vlgmr.msra.gmra.mxu3 %vm965_vm3, %v2434_v37  ;;  %v887_v41 = vrot.slane %v2437_v38, 7  ;;  %v928_v42 = vrot.slane %v2437_v38, 1  ;;  %v886_v49 = vrot.slane %v2434_v37, 7 }
 0x1d7   : > { %v2459_v50 = vsel %vm911_vm4, %v927_v40, %v928_v42  ;;  %v2464_v58 = vsel %vm870_vm5, %v886_v49, %v887_v41  ;;  %v712_v41 = vpop.permute.xlu2 %711 }
 0x1d8   : > { %v822_v48 = vsel %vm540_vm1, %v645_v28, %v712_v41 }
 0x1db   : > { %v736_v62 = vpop.permute.xlu0 %735  ;;  %v800_v45 = vpop.permute.xlu1 %799 }
 0x1dc   : > { %v834_v63 = vsel %vm540_vm1, %v2311_v44, %v736_v62 }
 0x1dd   : > { %1685 = vmatmul.msk.f32.gmra.mxu3 %vm965_vm3, %v2437_v38  ;;  %v2476_v2 = vsel %vm837_vm2, %v834_v63, %v800_v45 }
 0x1de   : > { %v890_v4 = vrot.slane %v2476_v2, 7  ;;  %v931_v5 = vrot.slane %v2476_v2, 1 }
 0x1df   : > { %v778_v3 = vpop.permute.xlu2 %777 }
 0x1e0   : > { %v2486_v44 = vsel %vm911_vm4, %v930_v0, %v931_v5  ;;  %v2491_v6 = vsel %vm870_vm5, %v889_v1, %v890_v4  ;;  %v950_v37 = vsel %vm911_vm4, %v931_v5, 0.0 }
 0x1e3   : > { %v802_v19 = vpop.permute.xlu0 %801  ;;  %v740_v21 = vpop.permute.xlu1 %739 }
 0x1e4   : > { %v836_v23 = vsel %vm540_vm1, %v2323_v47, %v740_v21  ;;  %v2498_v29 = vsel %vm837_vm2, %v835_v7, %v802_v19 }
 0x1e5   : > { %1686 = vmatmul.msk.f32.gmra.mxu3 %vm965_vm3, %v2467_v61  ;;  %v933_v30 = vrot.slane %v2498_v29, 1  ;;  %v2504_v31 = vsel %vm837_vm2, %v836_v23, %v804_v17  ;;  %v892_v32 = vrot.slane %v2498_v29, 7 }
 0x1e6   : > { %v893_v46 = vrot.slane %v2504_v31, 7  ;;  %v934_v33 = vrot.slane %v2504_v31, 1 }
 0x1e7   : > { %v910_v61 = vsel %vm870_vm5, 0.0, %v892_v32 }
 0x1e8   : > { %v2512_v47 = vsel %vm911_vm4, %v933_v30, %v934_v33  ;;  %v2517_v34 = vsel %vm870_vm5, %v892_v32, %v893_v46 }
 0x1eb   : > { %v710_v36 = vpop.permute.xlu0 %709  ;;  %v774_v39 = vpop.permute.xlu1 %773 }
 0x1ec   : > { %v821_v40 = vsel %vm540_vm1, %v644_v35, %v710_v36  ;;  %v718_v36 = vpop.permute.xlu2 %717 }
 0x1ed   : > { %1687 = vmatmul.msk.f32.gmra.mxu3 %vm965_vm3, %v2476_v2  ;;  %v838_v43 = vsel %vm837_vm2, %v821_v40, %v774_v39 }
 0x1ee   : > { %1674 = vmatmul.msk.f32.vlgmr.msrb.gmra.mxu0 %vm965_vm3, %v838_v43  ;;  %v912_v51 = vrot.slane %v838_v43, 1  ;;  %v871_v46 = vrot.slane %v838_v43, 7 }
 0x1f0   : > { %v903_v40 = vsel %vm870_vm5, 0.0, %v871_v46 }
 0x1f3   : > { %v776_v62 = vpop.permute.xlu0 %775  ;;  %v714_v45 = vpop.permute.xlu1 %713 }
 0x1f4   : > { %v839_v63 = vsel %vm837_vm2, %v822_v48, %v776_v62  ;;  %v823_v7 = vsel %vm540_vm1, %v2337_v52, %v714_v45  ;;  %v784_v62 = vpop.permute.xlu2 %783 }
 0x1f5   : > { %v913_v0 = vrot.slane %v839_v63, 1  ;;  %1688 = vmatmul.msk.f32.gmra.mxu3 %vm965_vm3, %v2498_v29  ;;  %v840_v30 = vsel %vm837_vm2, %v823_v7, %v778_v3  ;;  %v2660_v29 = vld [vmem:[%s2819_s5] ss:$0 sm:$0xff] }
 0x1f6   : > { %1675 = vmatmul.msk.f32.gmra.mxu0 %vm965_vm3, %v839_v63  ;;  %v915_v39 = vrot.slane %v840_v30, 1 }
 0x1f7   : > { %v914_v4 = vsel %vm911_vm4, %v912_v51, %v913_v0  ;;  %v944_v23 = vsel %vm911_vm4, %v913_v0, 0.0  ;;  %v872_v51 = vrot.slane %v839_v63, 7 }
 0x1f8   : > { %1712 = vmatmul.msk.f32.vlgmr.msrb.gmra.mxu1 %vm965_vm3, %v914_v4  ;;  %v874_v4 = vrot.slane %v840_v30, 7 }
 0x1f9   : > { %v873_v45 = vsel %vm870_vm5, %v871_v46, %v872_v51 }
 0x1fb   : > { %v716_v17 = vpop.permute.xlu0 %715  ;;  %v780_v19 = vpop.permute.xlu1 %779 }
 0x1fc   : > { %v824_v21 = vsel %vm540_vm1, %v2341_v54, %v716_v17  ;;  %v825_v54 = vsel %vm540_vm1, %v2339_v53, %v718_v36 }
 0x1fd   : > { %1689 = vmatmul.msk.f32.gmra.mxu3 %vm965_vm3, %v2504_v31  ;;  %v841_v35 = vsel %vm837_vm2, %v824_v21, %v780_v19  ;;  %v904_v21 = vsel %vm870_vm5, 0.0, %v874_v4 }
 0x1fe   : > { %1676 = vmatmul.msk.f32.gmra.mxu0 %vm965_vm3, %v840_v30  ;;  %v916_v52 = vrot.slane %v841_v35, 1  ;;  %v724_v30 = vpop.permute.xlu2 %723  ;;  %v875_v36 = vrot.slane %v841_v35, 7 }
 0x200   : > { %1713 = vmatmul.msk.f32.gmra.mxu1 %vm965_vm3, %v944_v23  ;;  %v917_v43 = vsel %vm911_vm4, %v915_v39, %v916_v52  ;;  %v945_v3 = vsel %vm911_vm4, %v916_v52, 0.0  ;;  %v828_v52 = vsel %vm540_vm1, %v2359_v57, %v724_v30 }
 0x203   : > { %v782_v41 = vpop.permute.xlu0 %781  ;;  %v720_v48 = vpop.permute.xlu1 %719 }
 0x204   : > { %v842_v28 = vsel %vm837_vm2, %v825_v54, %v782_v41  ;;  %v826_v53 = vsel %vm540_vm1, %v2349_v55, %v720_v48 }
 0x205   : > { %1690 = vmatmul.msk.f32.vlgmr.msrb.gmra.mxu3 %vm965_vm3, %v903_v40  ;;  %1678 = vmatmul.msk.f32.vlgmr.msra.gmra.mxu2 %vm965_vm3, %v842_v28  ;;  %v843_v0 = vsel %vm837_vm2, %v826_v53, %v784_v62  ;;  %v918_v17 = vrot.slane %v842_v28, 1  ;;  %v877_v41 = vrot.slane %v842_v28, 7 }
 0x206   : > { %1677 = vmatmul.msk.f32.gmra.mxu0 %vm965_vm3, %v841_v35  ;;  %v919_v63 = vrot.slane %v843_v0, 1  ;;  %v790_v51 = vpop.permute.xlu2 %789 }
 0x207   : > { %v905_v53 = vsel %vm870_vm5, 0.0, %v877_v41 }
 0x208   : > { %1714 = vmatmul.msk.f32.gmra.mxu1 %vm965_vm3, %v917_v43  ;;  %v920_v46 = vsel %vm911_vm4, %v918_v17, %v919_v63  ;;  %v946_v40 = vsel %vm911_vm4, %v919_v63, 0.0 }
 0x20b   : > { %v722_v7 = vpop.permute.xlu0 %721  ;;  %v786_v19 = vpop.permute.xlu1 %785 }
 0x20c   : > { %v827_v55 = vsel %vm540_vm1, %v2351_v56, %v722_v7  ;;  %v876_v56 = vsel %vm870_vm5, %v874_v4, %v875_v36 }
 0x20d   : > { %1691 = vmatmul.msk.f32.gmra.mxu3 %vm965_vm3, %v873_v45  ;;  %1679 = vmatmul.msk.f32.gmra.mxu2 %vm965_vm3, %v843_v0  ;;  %v844_v23 = vsel %vm837_vm2, %v827_v55, %v786_v19 }
 0x20e   : > { %v921_v35 = vrot.slane %v844_v23, 1  ;;  %v880_v55 = vrot.slane %v844_v23, 7 }
 0x210   : > { %1715 = vmatmul.msk.f32.gmra.mxu1 %vm965_vm3, %v945_v3  ;;  %v878_v3 = vrot.slane %v843_v0, 7 }
 0x213   : > { %v788_v39 = vpop.permute.xlu0 %787  ;;  %v726_v43 = vpop.permute.xlu1 %725 }
 0x214   : > { %v845_v54 = vsel %vm837_vm2, %v828_v52, %v788_v39  ;;  %v829_v57 = vsel %vm540_vm1, %v2370_v59, %v726_v43  ;;  %v879_v59 = vsel %vm870_vm5, %v877_v41, %v878_v3  ;;  %v1333_v52 = vld [vmem:[%s2820_s6 + $0x8] sm:$0xff]  ;;  %v908_v41 = vsel %vm870_vm5, 0.0, %v886_v49 }
 0x215   : > { %1692 = vmatmul.msk.f32.gmra.mxu3 %vm965_vm3, %v904_v21  ;;  %1680 = vmatmul.msk.f32.gmra.mxu2 %vm965_vm3, %v844_v23  ;;  %v922_v48 = vrot.slane %v845_v54, 1  ;;  %v846_v62 = vsel %vm837_vm2, %v829_v57, %v790_v51  ;;  %v906_v21 = vsel %vm870_vm5, 0.0, %v880_v55 }
 0x216   : > { %v924_v19 = vrot.slane %v846_v62, 1  ;;  %v883_v23 = vrot.slane %v846_v62, 7  ;;  %1400 = vmatpush.msrb.mxu2 %v1333_v52 }
 0x217   : > { %v923_v45 = vsel %vm911_vm4, %v921_v35, %v922_v48  ;;  %v947_v17 = vsel %vm911_vm4, %v922_v48, 0.0 }
 0x218   : > { %1716 = vmatmul.msk.f32.gmra.mxu1 %vm965_vm3, %v920_v46  ;;  %v881_v46 = vrot.slane %v845_v54, 7  ;;  %v907_v39 = vsel %vm870_vm5, 0.0, %v883_v23 }
 0x21a   : > { %v882_v30 = vsel %vm870_vm5, %v880_v55, %v881_v46 }
 0x21b   : > { %v728_v28 = vpop.permute.xlu0 %727  ;;  %v792_v7 = vpop.permute.xlu1 %791 }
 0x21c   : > { %v830_v4 = vsel %vm540_vm1, %v2372_v60, %v728_v28 }
 0x21d   : > { %1693 = vmatmul.msk.f32.gmra.mxu3 %vm965_vm3, %v876_v56  ;;  %1681 = vmatmul.msk.f32.gmra.mxu2 %vm965_vm3, %v845_v54  ;;  %v847_v63 = vsel %vm837_vm2, %v830_v4, %v792_v7 }
 0x21e   : > { %v925_v0 = vrot.slane %v847_v63, 1  ;;  %v884_v56 = vrot.slane %v847_v63, 7 }
 0x220   : > { %1717 = vmatmul.msk.f32.gmra.mxu1 %vm965_vm3, %v946_v40  ;;  %v926_v60 = vsel %vm911_vm4, %v924_v19, %v925_v0  ;;  %v948_v36 = vsel %vm911_vm4, %v925_v0, 0.0  ;;  %v885_v54 = vsel %vm870_vm5, %v883_v23, %v884_v56  ;;  %v949_v40 = vsel %vm911_vm4, %v928_v42, 0.0 }
 0x221   : > { %v909_v42 = vsel %vm870_vm5, 0.0, %v889_v1 }
 0x225   : > { %1694 = vmatmul.msk.f32.gmra.mxu3 %vm965_vm3, %v905_v53  ;;  %1682 = vmatmul.msk.f32.gmra.mxu2 %vm965_vm3, %v846_v62 }
 0x228   : > { %1718 = vmatmul.msk.f32.gmra.mxu1 %vm965_vm3, %v923_v45 }
 0x22d   : > { %1695 = vmatmul.msk.f32.gmra.mxu3 %vm965_vm3, %v879_v59  ;;  %1683 = vmatmul.msk.f32.gmra.mxu2 %vm965_vm3, %v847_v63 }
 0x230   : > { %1719 = vmatmul.msk.f32.gmra.mxu1 %vm965_vm3, %v947_v17 }
 0x235   : > { %1696 = vmatmul.msk.f32.gmra.mxu3 %vm965_vm3, %v906_v21 }
 0x238   : > { %1720 = vmatmul.msk.f32.gmra.mxu1 %vm965_vm3, %v926_v60 }
 0x23d   : > { %1697 = vmatmul.msk.f32.gmra.mxu3 %vm965_vm3, %v882_v30 }
 0x240   : > { %1721 = vmatmul.msk.f32.gmra.mxu1 %vm965_vm3, %v948_v36 }
 0x245   : > { %1698 = vmatmul.msk.f32.gmra.mxu3 %vm965_vm3, %v907_v39 }
 0x248   : > { %1722 = vmatmul.msk.f32.gmra.mxu1 %vm965_vm3, %v2459_v50  ;;  %v1332_v50 = vld [vmem:[%s2820_s6] sm:$0xff] }
 0x249   : > { %1401 = vmatpush.msrb.mxu2 %v1332_v50 }
 0x24d   : > { %1699 = vmatmul.msk.f32.gmra.mxu3 %vm965_vm3, %v885_v54 }
 0x250   : > { %1723 = vmatmul.msk.f32.gmra.mxu1 %vm965_vm3, %v949_v40 }
 0x255   : > { %1700 = vmatmul.msk.f32.gmra.mxu3 %vm965_vm3, %v908_v41 }
 0x258   : > { %v2616_v43 = vpop.f32.mrf.mxu3  ;;  %1724 = vmatmul.msk.f32.gmra.mxu1 %vm965_vm3, %v2486_v44 }
 0x25d   : > { %1701 = vmatmul.msk.f32.gmra.mxu3 %vm965_vm3, %v2464_v58  ;;  %v951_v58 = vsel %vm911_vm4, %v934_v33, 0.0 }
 0x260   : > { %v2628_v38 = vpop.f32.mrf.mxu3  ;;  %1725 = vmatmul.msk.f32.gmra.mxu1 %vm965_vm3, %v950_v37 }
 0x265   : > { %1702 = vmatmul.msk.f32.gmra.mxu3 %vm965_vm3, %v909_v42 }
 0x268   : > { %v2635_v49 = vpop.f32.mrf.mxu3  ;;  %1726 = vmatmul.msk.f32.gmra.mxu1 %vm965_vm3, %v2512_v47 }
 0x26b   : > { %v1015_v31 = vpop.f32.mrf.mxu0 }
 0x26d   : > { %1703 = vmatmul.msk.f32.gmra.mxu3 %vm965_vm3, %v2491_v6 }
 0x270   : > { %v2644_v2 = vpop.f32.mrf.mxu3  ;;  %1727 = vmatmul.msk.f32.gmra.mxu1 %vm965_vm3, %v951_v58 }
 0x273   : > { %v1018_v48 = vpop.f32.mrf.mxu0 }
 0x275   : > { %1704 = vmatmul.msk.f32.gmra.mxu3 %vm965_vm3, %v910_v61  ;;  %v1232_v1 = vpop.f32.mrf.mxu1 }
 0x278   : > { %v2651_v5 = vpop.f32.mrf.mxu3 }
 0x27b   : > { %v1021_v4 = vpop.f32.mrf.mxu0 }
 0x27d   : > { %1705 = vmatmul.msk.f32.gmra.mxu3 %vm965_vm3, %v2517_v34  ;;  %v1235_v44 = vpop.f32.mrf.mxu1 }
 0x280   : > { %v2655_v6 = vpop.f32.mrf.mxu3 }
 0x283   : > { %v1024_v60 = vpop.f32.mrf.mxu0 }
 0x285   : > { %v1238_v33 = vpop.f32.mrf.mxu1 }
 0x288   : > { %v1120_v47 = vpop.f32.mrf.mxu3  ;;  %v1027_v0 = vpop.f32.mrf.mxu2 }
 0x289   : > { %v1121_v35 = vadd.f32 %v1120_v47, %v1015_v31 }
 0x28b   : > { %v1280_v32 = vadd.f32 %v1232_v1, %v1121_v35 }
 0x28d   : > { %v1241_v57 = vpop.f32.mrf.mxu1  ;;  %v1300_v51 = vadd.f32 %v2660_v29, %v1280_v32 }
 0x28f   : > { %v1316_v53 = vmax.f32 %v1300_v51, 0.0 }
 0x290   : > { %v1123_v62 = vpop.f32.mrf.mxu3  ;;  %v1030_v39 = vpop.f32.mrf.mxu2 }
 0x291   : > { %v1124_v34 = vadd.f32 %v1123_v62, %v1018_v48  ;;  %1728 = vmatmul.msk.f32.vlgmr.msrb.gmra.mxu2 %vm540_vm1, %v1316_v53 }
 0x293   : > { %v1281_v45 = vadd.f32 %v1235_v44, %v1124_v34 }
 0x295   : > { %v1244_v28 = vpop.f32.mrf.mxu1  ;;  %v1301_v3 = vadd.f32 %v2660_v29, %v1281_v45 }
 0x297   : > { %v1317_v7 = vmax.f32 %v1301_v3, 0.0 }
 0x298   : > { %v1126_v59 = vpop.f32.mrf.mxu3  ;;  %v1033_v61 = vpop.f32.mrf.mxu2 }
 0x299   : > { %v1127_v63 = vadd.f32 %v1126_v59, %v1021_v4  ;;  %1729 = vmatmul.msk.f32.gmra.mxu2 %vm540_vm1, %v1317_v7 }
 0x29b   : > { %v1282_v17 = vadd.f32 %v1238_v33, %v1127_v63 }
 0x29d   : > { %v1302_v55 = vadd.f32 %v2660_v29, %v1282_v17  ;;  %v1247_v19 = vpop.f32.mrf.mxu1 }
 0x29f   : > { %v1318_v21 = vmax.f32 %v1302_v55, 0.0 }
 0x2a0   : > { %v1129_v46 = vpop.f32.mrf.mxu3  ;;  %v1036_v48 = vpop.f32.mrf.mxu2 }
 0x2a1   : > { %v1130_v30 = vadd.f32 %v1129_v46, %v1024_v60  ;;  %1730 = vmatmul.msk.f32.gmra.mxu2 %vm540_vm1, %v1318_v21 }
 0x2a3   : > { %v1283_v36 = vadd.f32 %v1241_v57, %v1130_v30 }
 0x2a5   : > { %v1303_v23 = vadd.f32 %v2660_v29, %v1283_v36  ;;  %v1250_v56 = vpop.f32.mrf.mxu1 }
 0x2a7   : > { %v1319_v52 = vmax.f32 %v1303_v23, 0.0 }
 0x2a8   : > { %v1132_v54 = vpop.f32.mrf.mxu3 }
 0x2a9   : > { %v1133_v40 = vadd.f32 %v1132_v54, %v1027_v0  ;;  %1731 = vmatmul.msk.f32.gmra.mxu2 %vm540_vm1, %v1319_v52 }
 0x2ab   : > { %v1284_v41 = vadd.f32 %v1244_v28, %v1133_v40  ;;  %v1039_v28 = vpop.f32.mrf.mxu2 }
 0x2ad   : > { %v1304_v50 = vadd.f32 %v2660_v29, %v1284_v41  ;;  %v1253_v1 = vpop.f32.mrf.mxu1 }
 0x2af   : > { %v1320_v37 = vmax.f32 %v1304_v50, 0.0 }
 0x2b0   : > { %v1135_v42 = vpop.f32.mrf.mxu3 }
 0x2b1   : > { %v1136_v58 = vadd.f32 %v1135_v42, %v1030_v39  ;;  %1732 = vmatmul.msk.f32.gmra.mxu2 %vm540_vm1, %v1320_v37 }
 0x2b3   : > { %v1285_v44 = vadd.f32 %v1247_v19, %v1136_v58  ;;  %v1042_v0 = vpop.f32.mrf.mxu2 }
 0x2b5   : > { %v1305_v31 = vadd.f32 %v2660_v29, %v1285_v44  ;;  %v1256_v57 = vpop.f32.mrf.mxu1 }
 0x2b7   : > { %v1321_v33 = vmax.f32 %v1305_v31, 0.0 }
 0x2b8   : > { %v1138_v47 = vpop.f32.mrf.mxu3 }
 0x2b9   : > { %v1139_v35 = vadd.f32 %v1138_v47, %v1033_v61  ;;  %1733 = vmatmul.msk.f32.gmra.mxu2 %vm540_vm1, %v1321_v33 }
 0x2bb   : > { %v1286_v32 = vadd.f32 %v1250_v56, %v1139_v35 }
 0x2bd   : > { %v1306_v51 = vadd.f32 %v2660_v29, %v1286_v32  ;;  %v1259_v4 = vpop.f32.mrf.mxu1 }
 0x2bf   : > { %v1322_v53 = vmax.f32 %v1306_v51, 0.0 }
 0x2c0   : > { %v1141_v62 = vpop.f32.mrf.mxu3 }
 0x2c1   : > { %v1142_v34 = vadd.f32 %v1141_v62, %v1036_v48  ;;  %1734 = vmatmul.msk.f32.gmra.mxu2 %vm540_vm1, %v1322_v53 }
 0x2c3   : > { %v1287_v45 = vadd.f32 %v1253_v1, %v1142_v34 }
 0x2c5   : > { %v1307_v3 = vadd.f32 %v2660_v29, %v1287_v45  ;;  %v1262_v21 = vpop.f32.mrf.mxu1 }
 0x2c7   : > { %v1323_v7 = vmax.f32 %v1307_v3, 0.0 }
 0x2c8   : > { %v1144_v59 = vpop.f32.mrf.mxu3 }
 0x2c9   : > { %v1145_v63 = vadd.f32 %v1144_v59, %v1039_v28  ;;  %1735 = vmatmul.msk.f32.gmra.mxu2 %vm540_vm1, %v1323_v7 }
 0x2cb   : > { %v1288_v17 = vadd.f32 %v1256_v57, %v1145_v63 }
 0x2cd   : > { %v1308_v55 = vadd.f32 %v2660_v29, %v1288_v17  ;;  %v1265_v56 = vpop.f32.mrf.mxu1 }
 0x2cf   : > { %v1324_v19 = vmax.f32 %v1308_v55, 0.0 }
 0x2d0   : > { %v1147_v60 = vpop.f32.mrf.mxu3 }
 0x2d1   : > { %v1148_v46 = vadd.f32 %v1147_v60, %v1042_v0  ;;  %1736 = vmatmul.msk.f32.gmra.mxu2 %vm540_vm1, %v1324_v19 }
 0x2d3   : > { %v1289_v30 = vadd.f32 %v1259_v4, %v1148_v46 }
 0x2d5   : > { %v1309_v36 = vadd.f32 %v2660_v29, %v1289_v30  ;;  %v1268_v58 = vpop.f32.mrf.mxu1 }
 0x2d7   : > { %v1325_v23 = vmax.f32 %v1309_v36, 0.0 }
 0x2d8   : > { %v1150_v52 = vpop.f32.mrf.mxu3 }
 0x2d9   : > { %v1151_v39 = vadd.f32 %v1150_v52, %v2616_v43  ;;  %1737 = vmatmul.msk.f32.gmra.mxu2 %vm540_vm1, %v1325_v23 }
 0x2db   : > { %v1290_v54 = vadd.f32 %v1262_v21, %v1151_v39 }
 0x2dd   : > { %v1310_v40 = vadd.f32 %v2660_v29, %v1290_v54  ;;  %v1271_v47 = vpop.f32.mrf.mxu1 }
 0x2df   : > { %v1326_v41 = vmax.f32 %v1310_v40, 0.0 }
 0x2e0   : > { %v1153_v50 = vpop.f32.mrf.mxu3 }
 0x2e1   : > { %v1154_v37 = vadd.f32 %v1153_v50, %v2628_v38  ;;  %1738 = vmatmul.msk.f32.gmra.mxu2 %vm540_vm1, %v1326_v41 }
 0x2e3   : > { %v1291_v42 = vadd.f32 %v1265_v56, %v1154_v37 }
 0x2e5   : > { %v1311_v61 = vadd.f32 %v2660_v29, %v1291_v42  ;;  %v1274_v53 = vpop.f32.mrf.mxu1 }
 0x2e7   : > { %v1327_v1 = vmax.f32 %v1311_v61, 0.0 }
 0x2e8   : > { %v1156_v44 = vpop.f32.mrf.mxu3 }
 0x2e9   : > { %v1157_v43 = vadd.f32 %v1156_v44, %v2635_v49  ;;  %1739 = vmatmul.msk.f32.gmra.mxu2 %vm540_vm1, %v1327_v1 }
 0x2eb   : > { %v1292_v31 = vadd.f32 %v1268_v58, %v1157_v43 }
 0x2ed   : > { %v1312_v33 = vadd.f32 %v2660_v29, %v1292_v31  ;;  %v1277_v4 = vpop.f32.mrf.mxu1 }
 0x2ef   : > { %v1328_v35 = vmax.f32 %v1312_v33, 0.0 }
 0x2f0   : > { %v1159_v32 = vpop.f32.mrf.mxu3 }
 0x2f1   : > { %v1160_v38 = vadd.f32 %v1159_v32, %v2644_v2  ;;  %1740 = vmatmul.msk.f32.gmra.mxu2 %vm540_vm1, %v1328_v35 }
 0x2f3   : > { %v1293_v48 = vadd.f32 %v1271_v47, %v1160_v38 }
 0x2f5   : > { %v1313_v57 = vadd.f32 %v2660_v29, %v1293_v48 }
 0x2f7   : > { %v1329_v51 = vmax.f32 %v1313_v57, 0.0 }
 0x2f8   : > { %v1162_v62 = vpop.f32.mrf.mxu3 }
 0x2f9   : > { %v1163_v49 = vadd.f32 %v1162_v62, %v2651_v5  ;;  %1741 = vmatmul.msk.f32.gmra.mxu2 %vm540_vm1, %v1329_v51  ;;  %v2703_v5 = vld [vmem:[%s2821_s7] ss:$0 sm:$0xff] }
 0x2fb   : > { %v1294_v34 = vadd.f32 %v1274_v53, %v1163_v49 }
 0x2fd   : > { %v1314_v45 = vadd.f32 %v2660_v29, %v1294_v34 }
 0x2ff   : > { %v1330_v28 = vmax.f32 %v1314_v45, 0.0 }
 0x300   : > { %v1165_v3 = vpop.f32.mrf.mxu3 }
 0x301   : > { %v1166_v2 = vadd.f32 %v1165_v3, %v2655_v6  ;;  %1742 = vmatmul.msk.f32.gmra.mxu2 %vm540_vm1, %v1330_v28 }
 0x303   : > { %v1295_v7 = vadd.f32 %v1277_v4, %v1166_v2 }
 0x305   : > { %v1315_v59 = vadd.f32 %v2660_v29, %v1295_v7 }
 0x307   : > { %v1331_v63 = vmax.f32 %v1315_v59, 0.0 }
 0x309   : > { %1743 = vmatmul.msk.f32.gmra.mxu2 %vm540_vm1, %v1331_v63 }
 0x314   : > { %v1403_v17 = vpop.f32.mrf.mxu2 }
 0x315   : > { %v1404_v55 = vadd.f32 %v2703_v5, %v1403_v17 }
 0x317   : > { %v1451_v6 = vadd.f32 %v1404_v55, %v2165_v8 }
 0x319   : > { %v1467_v0 = vmax.f32 %v1451_v6, 0.0 }
 0x31b   : > { %1483 = vst.msk [vmem:[%s2297_s29] sm:$0xff] %vm409_vm0, %v1467_v0 }
 0x31c   : > { %v1406_v19 = vpop.f32.mrf.mxu2 }
 0x31d   : > { %v1407_v29 = vadd.f32 %v2703_v5, %v1406_v19 }
 0x31f   : > { %v1452_v21 = vadd.f32 %v1407_v29, %v2170_v9 }
 0x321   : > { %v1468_v60 = vmax.f32 %v1452_v21, 0.0 }
 0x323   : > { %1484 = vst.msk [vmem:[%s2297_s29 + $0x8] sm:$0xff] %vm409_vm0, %v1468_v60 }
 0x324   : > { %v1409_v46 = vpop.f32.mrf.mxu2 }
 0x325   : > { %v1410_v30 = vadd.f32 %v2703_v5, %v1409_v46 }
 0x327   : > { %v1453_v36 = vadd.f32 %v1410_v30, %v2175_v10 }
 0x329   : > { %v1469_v23 = vmax.f32 %v1453_v36, 0.0 }
 0x32b   : > { %1485 = vst.msk [vmem:[%s2297_s29 + $0x10] sm:$0xff] %vm409_vm0, %v1469_v23 }
 0x32c   : > { %v1412_v8 = vpop.f32.mrf.mxu2 }
 0x32d   : > { %v1413_v52 = vadd.f32 %v2703_v5, %v1412_v8 }
 0x32f   : > { %v1454_v39 = vadd.f32 %v1413_v52, %v2180_v11 }
 0x331   : > { %v1470_v56 = vmax.f32 %v1454_v39, 0.0 }
 0x333   : > { %1486 = vst.msk [vmem:[%s2297_s29 + $0x18] sm:$0xff] %vm409_vm0, %v1470_v56 }
 0x334   : > { %v1415_v9 = vpop.f32.mrf.mxu2 }
 0x335   : > { %v1416_v54 = vadd.f32 %v2703_v5, %v1415_v9 }
 0x337   : > { %v1455_v40 = vadd.f32 %v1416_v54, %v2185_v12 }
 0x339   : > { %v1471_v41 = vmax.f32 %v1455_v40, 0.0 }
 0x33b   : > { %1487 = vst.msk [vmem:[%s2297_s29 + $0x20] sm:$0xff] %vm409_vm0, %v1471_v41 }
 0x33c   : > { %v1418_v10 = vpop.f32.mrf.mxu2 }
 0x33d   : > { %v1419_v50 = vadd.f32 %v2703_v5, %v1418_v10 }
 0x33f   : > { %v1456_v37 = vadd.f32 %v1419_v50, %v2190_v13 }
 0x341   : > { %v1472_v42 = vmax.f32 %v1456_v37, 0.0 }
 0x343   : > { %1488 = vst.msk [vmem:[%s2297_s29 + $0x28] sm:$0xff] %vm409_vm0, %v1472_v42 }
 0x344   : > { %v1421_v11 = vpop.f32.mrf.mxu2 }
 0x345   : > { %v1422_v58 = vadd.f32 %v2703_v5, %v1421_v11 }
 0x347   : > { %v1457_v61 = vadd.f32 %v1422_v58, %v2197_v14 }
 0x349   : > { %v1473_v1 = vmax.f32 %v1457_v61, 0.0 }
 0x34b   : > { %1489 = vst.msk [vmem:[%s2297_s29 + $0x30] sm:$0xff] %vm409_vm0, %v1473_v1 }
 0x34c   : > { %v1424_v12 = vpop.f32.mrf.mxu2 }
 0x34d   : > { %v1425_v44 = vadd.f32 %v2703_v5, %v1424_v12 }
 0x34f   : > { %v1458_v43 = vadd.f32 %v1425_v44, %v2204_v15 }
 0x351   : > { %v1474_v31 = vmax.f32 %v1458_v43, 0.0 }
 0x353   : > { %1490 = vst.msk [vmem:[%s2297_s29 + $0x38] sm:$0xff] %vm409_vm0, %v1474_v31 }
 0x354   : > { %v1427_v13 = vpop.f32.mrf.mxu2 }
 0x355   : > { %v1428_v33 = vadd.f32 %v2703_v5, %v1427_v13 }
 0x357   : > { %v1459_v47 = vadd.f32 %v1428_v33, %v2209_v16 }
 0x359   : > { %v1475_v35 = vmax.f32 %v1459_v47, 0.0 }
 0x35b   : > { %1491 = vst.msk [vmem:[%s2297_s29 + $0x40] sm:$0xff] %vm409_vm0, %v1475_v35 }
 0x35c   : > { %v1430_v14 = vpop.f32.mrf.mxu2 }
 0x35d   : > { %v1431_v32 = vadd.f32 %v2703_v5, %v1430_v14 }
 0x35f   : > { %v1460_v38 = vadd.f32 %v1431_v32, %v2218_v18 }
 0x361   : > { %v1476_v48 = vmax.f32 %v1460_v38, 0.0 }
 0x363   : > { %1492 = vst.msk [vmem:[%s2297_s29 + $0x48] sm:$0xff] %vm409_vm0, %v1476_v48 }
 0x364   : > { %v1433_v15 = vpop.f32.mrf.mxu2 }
 0x365   : > { %v1434_v57 = vadd.f32 %v2703_v5, %v1433_v15 }
 0x367   : > { %v1461_v51 = vadd.f32 %v1434_v57, %v2224_v20 }
 0x369   : > { %v1477_v53 = vmax.f32 %v1461_v51, 0.0 }
 0x36b   : > { %1493 = vst.msk [vmem:[%s2297_s29 + $0x50] sm:$0xff] %vm409_vm0, %v1477_v53 }
 0x36c   : > { %v1436_v16 = vpop.f32.mrf.mxu2 }
 0x36d   : > { %v1437_v62 = vadd.f32 %v2703_v5, %v1436_v16 }
 0x36f   : > { %v1462_v18 = vadd.f32 %v1437_v62, %v2230_v22 }
 0x371   : > { %v1478_v49 = vmax.f32 %v1462_v18, 0.0 }
 0x373   : > { %1494 = vst.msk [vmem:[%s2297_s29 + $0x58] sm:$0xff] %vm409_vm0, %v1478_v49 }
 0x374   : > { %v1439_v34 = vpop.f32.mrf.mxu2 }
 0x375   : > { %v1440_v45 = vadd.f32 %v2703_v5, %v1439_v34 }
 0x377   : > { %v1463_v28 = vadd.f32 %v1440_v45, %v2236_v24 }
 0x379   : > { %v1479_v20 = vmax.f32 %v1463_v28, 0.0 }
 0x37b   : > { %1495 = vst.msk [vmem:[%s2297_s29 + $0x60] sm:$0xff] %vm409_vm0, %v1479_v20 }
 0x37c   : > { %v1442_v3 = vpop.f32.mrf.mxu2 }
 0x37d   : > { %v1443_v2 = vadd.f32 %v2703_v5, %v1442_v3 }
 0x37f   : > { %v1464_v4 = vadd.f32 %v1443_v2, %v2241_v25 }
 0x381   : > { %v1480_v7 = vmax.f32 %v1464_v4, 0.0 }
 0x383   : > { %1496 = vst.msk [vmem:[%s2297_s29 + $0x68] sm:$0xff] %vm409_vm0, %v1480_v7 }
 0x384   : > { %v1445_v22 = vpop.f32.mrf.mxu2 }
 0x385   : > { %v1446_v24 = vadd.f32 %v2703_v5, %v1445_v22 }
 0x387   : > { %v1465_v59 = vadd.f32 %v1446_v24, %v2246_v26 }
 0x389   : > { %v1481_v63 = vmax.f32 %v1465_v59, 0.0 }
 0x38b   : > { %1497 = vst.msk [vmem:[%s2297_s29 + $0x70] sm:$0xff] %vm409_vm0, %v1481_v63 }
 0x38c   : > { %v1448_v25 = vpop.f32.mrf.mxu2 }
 0x38d   : > { %v1449_v17 = vadd.f32 %v2703_v5, %v1448_v25 }
 0x38f   : > { %v1466_v55 = vadd.f32 %v1449_v17, %v2251_v27 }
 0x391   : > { %v1482_v6 = vmax.f32 %v1466_v55, 0.0 }
 0x393   : > { %1498 = vst.msk [vmem:[%s2297_s29 + $0x78] sm:$0xff] %vm409_vm0, %v1482_v6 }
 0x394   : > { %1912 = shalt.err (!%p1909_p3)
}
 0x395   : > { %s1991_s8 = smov 128   ;;  %s1992_s29 = smov 8  }
 0x396   : > { %1767 = dma.vmem_to_hbm [thread:$0]  (%p2103_p9), %s1516_s30, 2048, %s1518_s9, %s1500_s22, %s1991_s8, %s1991_s8, %s1992_s29  }
 0x397 PF: > { %s2845_s24 = sld [smem:[#allocation9_spill]]  ;;  %p1778_p5 = scmp.ge.s32.totalorder %s1983_s12, 2 }
 0x399   : > { %p1774_p6 = pnand %p1778_p5, %p2109_p12 }
 0x39b   : > { %p1775_p7 = pneg %p1774_p6 }
 0x39d   : > { %s1532_s26 = sand.u32 1, %s2845_s24  }
 0x39e   : > { %s1533_s13 = scalar_lea.sflag [#allocation5], %s1532_s26 }
 0x39f   : > { %1950 = dma.done.wait (%p1775_p7), %s1533_s13, 2048  }
 0x3a0   : > { %1952 = vsyncadd (%p1775_p7), %s1533_s13, 4294965248  ;;  %s24_s12 = sadd.s32 1, %s1983_s12   ;;  %s2847_s14 = sld [smem:[#allocation10_spill]] }
 0x3a1   : > { %p21_p8 = scmp.ge.s32.totalorder %s24_s12, 6   ;;  %s2848_s29 = sld [smem:[#allocation15_spill]] }
 0x3a2   : > { %s2849_s18 = sld [smem:[#allocation11_spill]]  ;;  %s2851_s27 = smov %s1959_s28 }
 0x3a3   : > { %s2850_s22 = sld [smem:[#allocation12_spill]]  ;;  %s2853_s30 = smov %s1975_s10 }
 0x3a4   : > { %s2854_s9 = smov %s1979_s11 }
 0x3a5   :  { %23 = sbr.rel (!%p21_p8) target bundleno = 9 (0x9), region = 122 }
 0x3a6   : > { %s2852_s28 = smov %s2847_s14 }
 0x3a8   : > { %s2855_s10 = smov %s2849_s18 }
 0x3a9   : > { %s2856_s11 = smov %s2850_s22 }
 0x3aa   :  { %1539 = vsyncpa [#allocation4], 1 }
 0x3ab   :  { %1541 = vsyncpa [#allocation4 + $0x1], 1 }
 0x3ac   :  { %1542 = vsyncpa [#allocation5], 1 }
 0x3ad   :  { %1544 = vsyncpa [#allocation5 + $0x1], 1 }

</bundles_post_ra>
